<compile_context>
chip_gen: v5e
topology: v5e:2x2
jax: 0.10.0
libtpu: 0.0.40
codegen_flags: <defaults>
</compile_context>

<pallas_src>
import jax
import jax.numpy as jnp
from jax.experimental import pallas as pl
from jax.experimental.pallas import tpu as pltpu

IN_FEATURES = 1440      # original feature width (from the PyTorch module)
IN_PAD = 1536           # feature dim padded to a multiple of 128 lanes (in VMEM only)
HIDDEN = 128
# decoder-output column chunk boundaries (lane-aligned starts; last chunk 416 wide)
OUT_CHUNK_BOUNDS = (0, 512, 1024, IN_FEATURES)


def _round_up(n, m):
    return ((n + m - 1) // m) * m


def ae_kernel(x_ref,
              w1_ref, b1_ref,
              w2_ref, b2_ref,
              w3_ref, b3_ref,
              w4_ref, b4_ref,
              o_ref,
              xpad_ref):
    tb = x_ref.shape[0]

    # Pad x 1440 -> 1536 in VMEM (no HBM pad pass).  Zero the tail every step:
    # the scratch may be per-core / uninitialized, and garbage * 0 can be NaN,
    # so we never rely on w1's zero rows alone.  Cost: one 96-lane masked store.
    xpad_ref[:, IN_FEATURES:IN_PAD] = jnp.zeros((tb, IN_PAD - IN_FEATURES), jnp.bfloat16)
    xpad_ref[:, :IN_FEATURES] = x_ref[...]

    # encoder hidden layer + relu   (MXU in bf16, f32 accumulate, f32 epilogue)
    h1 = jnp.dot(xpad_ref[...], w1_ref[...],
                 preferred_element_type=jnp.float32) + b1_ref[...]
    h1 = jnp.maximum(h1, 0.0).astype(jnp.bfloat16)

    # encoder output layer + relu
    code = jnp.dot(h1, w2_ref[...], preferred_element_type=jnp.float32) + b2_ref[...]
    code = jnp.maximum(code, 0.0).astype(jnp.bfloat16)

    # decoder hidden layer + relu
    h2 = jnp.dot(code, w3_ref[...], preferred_element_type=jnp.float32) + b3_ref[...]
    h2 = jnp.maximum(h2, 0.0).astype(jnp.bfloat16)

    # decoder output layer + relu, chunked over the 1440-wide output so the
    # (tb, 1440) f32 result never has to live in registers all at once; chunk
    # starts are 128-lane aligned, only the final 416-wide chunk ends in a
    # masked vreg store.
    for c in range(len(OUT_CHUNK_BOUNDS) - 1):
        lo, hi = OUT_CHUNK_BOUNDS[c], OUT_CHUNK_BOUNDS[c + 1]
        rec = jnp.dot(h2, w4_ref[:, lo:hi],
                      preferred_element_type=jnp.float32) + b4_ref[:, lo:hi]
        o_ref[:, lo:hi] = jnp.maximum(rec, 0.0).astype(o_ref.dtype)


def ae_forward(x, kparams, *, block_b=512):
    """x: [B, 1440] float32 (or bf16). kparams: see prepare_kernel_params."""
    B = x.shape[0]
    # batch tile: multiple of 16 sublanes (bf16 packing), capped by padded batch
    tb = _round_up(min(block_b, _round_up(max(B, 16), 16)), 16)
    Bp = _round_up(B, tb)

    # ship x as bf16 (the MXU consumes bf16 anyway) — halves input HBM traffic;
    # only pad batch rows (feature padding happens in-kernel in VMEM).
    xb = x.astype(jnp.bfloat16)
    if Bp != B:
        xb = jnp.pad(xb, ((0, Bp - B), (0, 0)))

    def const_spec(shape):
        return pl.BlockSpec(shape, lambda i: (0,) * len(shape))

    out = pl.pallas_call(
        ae_kernel,
        out_shape=jax.ShapeDtypeStruct((Bp, IN_FEATURES), jnp.float32),
        grid=(Bp // tb,),
        in_specs=[
            pl.BlockSpec((tb, IN_FEATURES), lambda i: (i, 0)),        # x tile (bf16)
            const_spec((IN_PAD, HIDDEN)), const_spec((1, HIDDEN)),    # w1, b1
            const_spec((HIDDEN, HIDDEN)), const_spec((1, HIDDEN)),    # w2, b2
            const_spec((HIDDEN, HIDDEN)), const_spec((1, HIDDEN)),    # w3, b3
            const_spec((HIDDEN, IN_FEATURES)),                        # w4 (unpadded)
            const_spec((1, IN_FEATURES)),                             # b4 (unpadded)
        ],
        out_specs=pl.BlockSpec((tb, IN_FEATURES), lambda i: (i, 0)),
        scratch_shapes=[pltpu.VMEM((tb, IN_PAD), jnp.bfloat16)],      # in-VMEM padded x
        compiler_params=pltpu.CompilerParams(
            # "parallel" lets multi-TC parts shard the batch grid; keep the
            # 32 MiB VMEM cap so the same tiling fits v7x's 64 MiB/TC.
            dimension_semantics=(pltpu.PARALLEL,),
            vmem_limit_bytes=32 << 20,
        ),
    )(xb,
      kparams["w1"], kparams["b1"],
      kparams["w2"], kparams["b2"],
      kparams["w3"], kparams["b3"],
      kparams["w4"], kparams["b4"])

    return out if Bp == B else out[:B]


def init_params(key):
    """PyTorch-style params: weight (out, in), bias (out,), uniform ±1/sqrt(fan_in)."""
    def linear(key, fan_in, fan_out):
        kw, kb = jax.random.split(key)
        bound = 1.0 / jnp.sqrt(jnp.float32(fan_in))
        w = jax.random.uniform(kw, (fan_out, fan_in), jnp.float32, -bound, bound)
        b = jax.random.uniform(kb, (fan_out,), jnp.float32, -bound, bound)
        return w, b

    k1, k2, k3, k4 = jax.random.split(key, 4)
    w1, b1 = linear(k1, IN_FEATURES, HIDDEN)   # encoder_hidden_layer
    w2, b2 = linear(k2, HIDDEN, HIDDEN)        # encoder_output_layer
    w3, b3 = linear(k3, HIDDEN, HIDDEN)        # decoder_hidden_layer
    w4, b4 = linear(k4, HIDDEN, IN_FEATURES)   # decoder_output_layer
    return dict(w1=w1, b1=b1, w2=w2, b2=b2, w3=w3, b3=b3, w4=w4, b4=b4)


def prepare_kernel_params(p):
    """One-time pack: transpose to (in, out), pad only w1's K dim, weights -> bf16."""
    w1 = jnp.zeros((IN_PAD, HIDDEN), jnp.bfloat16).at[:IN_FEATURES, :].set(
        p["w1"].T.astype(jnp.bfloat16))
    w2 = p["w2"].T.astype(jnp.bfloat16)
    w3 = p["w3"].T.astype(jnp.bfloat16)
    w4 = p["w4"].T.astype(jnp.bfloat16)                       # (128, 1440), unpadded
    b1 = p["b1"].reshape(1, HIDDEN).astype(jnp.float32)
    b2 = p["b2"].reshape(1, HIDDEN).astype(jnp.float32)
    b3 = p["b3"].reshape(1, HIDDEN).astype(jnp.float32)
    b4 = p["b4"].reshape(1, IN_FEATURES).astype(jnp.float32)  # (1, 1440), unpadded
    return dict(w1=w1, b1=b1, w2=w2, b2=b2, w3=w3, b3=b3, w4=w4, b4=b4)


def ae_reference(x, p):
    """Pure-JAX reference mirroring the kernel numerics (bf16 MXU inputs, f32 accumulate)."""
    def lin(t, w, b):
        t16 = t.astype(jnp.bfloat16).astype(jnp.float32)
        w16 = w.astype(jnp.bfloat16).astype(jnp.float32)
        return t16 @ w16.T + b

    relu = lambda t: jnp.maximum(t, 0.0)
    h = relu(lin(x, p["w1"], p["b1"]))
    c = relu(lin(h, p["w2"], p["b2"]))
    h = relu(lin(c, p["w3"], p["b3"]))
    return relu(lin(h, p["w4"], p["b4"]))


if __name__ == "__main__":
    key = jax.random.PRNGKey(0)
    k_params, k_x = jax.random.split(key)

    params = init_params(k_params)
    kparams = prepare_kernel_params(params)

    # small batch, deliberately not a multiple of the batch tile to exercise
    # both the batch grid (2 steps) and the batch-row padding path.
    B = 20
    x = jax.random.normal(k_x, (B, IN_FEATURES), dtype=jnp.float32)

    out = ae_forward(x, kparams, block_b=16)
    jax.block_until_ready(out)

    ref = ae_reference(x, params)
    assert out.shape == (B, IN_FEATURES)
    assert out.dtype == jnp.float32
    assert jnp.allclose(out, ref, atol=1e-2, rtol=1e-2), float(jnp.max(jnp.abs(out - ref)))

    print("KERNEL_OK")
</pallas_src>

<mosaic_0001>
module attributes {stable_mosaic.version = 11 : i64} {
  func.func @ae_kernel(%arg0: i32, %arg1: memref<16x1440xbf16, #tpu.memory_space<vmem>>, %arg2: memref<1536x128xbf16, #tpu.memory_space<vmem>>, %arg3: memref<1x128xf32, #tpu.memory_space<vmem>>, %arg4: memref<128x128xbf16, #tpu.memory_space<vmem>>, %arg5: memref<1x128xf32, #tpu.memory_space<vmem>>, %arg6: memref<128x128xbf16, #tpu.memory_space<vmem>>, %arg7: memref<1x128xf32, #tpu.memory_space<vmem>>, %arg8: memref<128x1440xbf16, #tpu.memory_space<vmem>>, %arg9: memref<1x1440xf32, #tpu.memory_space<vmem>>, %arg10: memref<16x1440xf32, #tpu.memory_space<vmem>>, %arg11: memref<16x1536xbf16, #tpu.memory_space<vmem>>) attributes {dimension_semantics = [#tpu.dimension_semantics<parallel>], iteration_bounds = array<i64: 2>, scalar_prefetch = 0 : i64, scratch_operands = 1 : i64, tpu.core_type = #tpu.core_type<tc>, window_params = [{transform_indices = @transform_0, window_bounds = array<i64: 16, 1440>}, {pipeline_mode = #tpu.pipeline_mode<synchronous>, transform_indices = @transform_1, window_bounds = array<i64: 1536, 128>}, {pipeline_mode = #tpu.pipeline_mode<synchronous>, transform_indices = @transform_2, window_bounds = array<i64: 1, 128>}, {pipeline_mode = #tpu.pipeline_mode<synchronous>, transform_indices = @transform_3, window_bounds = array<i64: 128, 128>}, {pipeline_mode = #tpu.pipeline_mode<synchronous>, transform_indices = @transform_4, window_bounds = array<i64: 1, 128>}, {pipeline_mode = #tpu.pipeline_mode<synchronous>, transform_indices = @transform_5, window_bounds = array<i64: 128, 128>}, {pipeline_mode = #tpu.pipeline_mode<synchronous>, transform_indices = @transform_6, window_bounds = array<i64: 1, 128>}, {pipeline_mode = #tpu.pipeline_mode<synchronous>, transform_indices = @transform_7, window_bounds = array<i64: 128, 1440>}, {pipeline_mode = #tpu.pipeline_mode<synchronous>, transform_indices = @transform_8, window_bounds = array<i64: 1, 1440>}, {transform_indices = @transform_9, window_bounds = array<i64: 16, 1440>}]} {
    %cst = arith.constant 0.000000e+00 : bf16
    %0 = vector.broadcast %cst : bf16 to vector<16x96xbf16>
    %c0 = arith.constant 0 : index
    %c1440 = arith.constant 1440 : index
    %1 = vector.load %arg11[%c0, %c1440] : memref<16x1536xbf16, #tpu.memory_space<vmem>>, vector<16x96xbf16>
    tpu.vector_store %arg11[%c0, %c1440], %0 {strides = array<i32>} : memref<16x1536xbf16, #tpu.memory_space<vmem>>, vector<16x96xbf16>,
    %c0_0 = arith.constant 0 : index
    %c0_1 = arith.constant 0 : index
    %2 = vector.load %arg1[%c0_0, %c0_1] : memref<16x1440xbf16, #tpu.memory_space<vmem>>, vector<16x1440xbf16>
    %c0_2 = arith.constant 0 : index
    %c0_3 = arith.constant 0 : index
    %3 = vector.load %arg11[%c0_2, %c0_3] : memref<16x1536xbf16, #tpu.memory_space<vmem>>, vector<16x1440xbf16>
    tpu.vector_store %arg11[%c0_2, %c0_3], %2 {strides = array<i32>} : memref<16x1536xbf16, #tpu.memory_space<vmem>>, vector<16x1440xbf16>,
    %c0_4 = arith.constant 0 : index
    %c0_5 = arith.constant 0 : index
    %4 = vector.load %arg11[%c0_4, %c0_5] : memref<16x1536xbf16, #tpu.memory_space<vmem>>, vector<16x1536xbf16>
    %c0_6 = arith.constant 0 : index
    %c0_7 = arith.constant 0 : index
    %5 = vector.load %arg2[%c0_6, %c0_7] : memref<1536x128xbf16, #tpu.memory_space<vmem>>, vector<1536x128xbf16>
    %cst_8 = arith.constant dense<0.000000e+00> : vector<16x128xf32>
    %6 = tpu.matmul %4, %5, %cst_8 {dimension_numbers = #tpu.dot_dimension_numbers<[1], [0], [0], [1], [0, 0, 1, 1], [], []>} : vector<16x1536xbf16>, vector<1536x128xbf16>, vector<16x128xf32> -> vector<16x128xf32>
    %c0_9 = arith.constant 0 : index
    %c0_10 = arith.constant 0 : index
    %7 = vector.load %arg3[%c0_9, %c0_10] : memref<1x128xf32, #tpu.memory_space<vmem>>, vector<1x128xf32>
    %8 = vector.broadcast %7 : vector<1x128xf32> to vector<16x128xf32>
    %9 = arith.addf %6, %8 : vector<16x128xf32>
    %cst_11 = arith.constant 0.000000e+00 : f32
    %10 = vector.broadcast %cst_11 : f32 to vector<16x128xf32>
    %11 = arith.maximumf %9, %10 : vector<16x128xf32>
    %12 = arith.truncf %11 : vector<16x128xf32> to vector<16x128xbf16>
    %c0_12 = arith.constant 0 : index
    %c0_13 = arith.constant 0 : index
    %13 = vector.load %arg4[%c0_12, %c0_13] : memref<128x128xbf16, #tpu.memory_space<vmem>>, vector<128x128xbf16>
    %cst_14 = arith.constant dense<0.000000e+00> : vector<16x128xf32>
    %14 = tpu.matmul %12, %13, %cst_14 {dimension_numbers = #tpu.dot_dimension_numbers<[1], [0], [0], [1], [0, 0, 1, 1], [], []>} : vector<16x128xbf16>, vector<128x128xbf16>, vector<16x128xf32> -> vector<16x128xf32>
    %c0_15 = arith.constant 0 : index
    %c0_16 = arith.constant 0 : index
    %15 = vector.load %arg5[%c0_15, %c0_16] : memref<1x128xf32, #tpu.memory_space<vmem>>, vector<1x128xf32>
    %16 = vector.broadcast %15 : vector<1x128xf32> to vector<16x128xf32>
    %17 = arith.addf %14, %16 : vector<16x128xf32>
    %cst_17 = arith.constant 0.000000e+00 : f32
    %18 = vector.broadcast %cst_17 : f32 to vector<16x128xf32>
    %19 = arith.maximumf %17, %18 : vector<16x128xf32>
    %20 = arith.truncf %19 : vector<16x128xf32> to vector<16x128xbf16>
    %c0_18 = arith.constant 0 : index
    %c0_19 = arith.constant 0 : index
    %21 = vector.load %arg6[%c0_18, %c0_19] : memref<128x128xbf16, #tpu.memory_space<vmem>>, vector<128x128xbf16>
    %cst_20 = arith.constant dense<0.000000e+00> : vector<16x128xf32>
    %22 = tpu.matmul %20, %21, %cst_20 {dimension_numbers = #tpu.dot_dimension_numbers<[1], [0], [0], [1], [0, 0, 1, 1], [], []>} : vector<16x128xbf16>, vector<128x128xbf16>, vector<16x128xf32> -> vector<16x128xf32>
    %c0_21 = arith.constant 0 : index
    %c0_22 = arith.constant 0 : index
    %23 = vector.load %arg7[%c0_21, %c0_22] : memref<1x128xf32, #tpu.memory_space<vmem>>, vector<1x128xf32>
    %24 = vector.broadcast %23 : vector<1x128xf32> to vector<16x128xf32>
    %25 = arith.addf %22, %24 : vector<16x128xf32>
    %cst_23 = arith.constant 0.000000e+00 : f32
    %26 = vector.broadcast %cst_23 : f32 to vector<16x128xf32>
    %27 = arith.maximumf %25, %26 : vector<16x128xf32>
    %28 = arith.truncf %27 : vector<16x128xf32> to vector<16x128xbf16>
    %c0_24 = arith.constant 0 : index
    %c0_25 = arith.constant 0 : index
    %29 = vector.load %arg8[%c0_24, %c0_25] : memref<128x1440xbf16, #tpu.memory_space<vmem>>, vector<128x512xbf16>
    %cst_26 = arith.constant dense<0.000000e+00> : vector<16x512xf32>
    %30 = tpu.matmul %28, %29, %cst_26 {dimension_numbers = #tpu.dot_dimension_numbers<[1], [0], [0], [1], [0, 0, 1, 1], [], []>} : vector<16x128xbf16>, vector<128x512xbf16>, vector<16x512xf32> -> vector<16x512xf32>
    %c0_27 = arith.constant 0 : index
    %c0_28 = arith.constant 0 : index
    %31 = vector.load %arg9[%c0_27, %c0_28] : memref<1x1440xf32, #tpu.memory_space<vmem>>, vector<1x512xf32>
    %32 = vector.broadcast %31 : vector<1x512xf32> to vector<16x512xf32>
    %33 = arith.addf %30, %32 : vector<16x512xf32>
    %cst_29 = arith.constant 0.000000e+00 : f32
    %34 = vector.broadcast %cst_29 : f32 to vector<16x512xf32>
    %35 = arith.maximumf %33, %34 : vector<16x512xf32>
    %c0_30 = arith.constant 0 : index
    %c0_31 = arith.constant 0 : index
    %36 = vector.load %arg10[%c0_30, %c0_31] : memref<16x1440xf32, #tpu.memory_space<vmem>>, vector<16x512xf32>
    tpu.vector_store %arg10[%c0_30, %c0_31], %35 {strides = array<i32>} : memref<16x1440xf32, #tpu.memory_space<vmem>>, vector<16x512xf32>,
    %c0_32 = arith.constant 0 : index
    %c512 = arith.constant 512 : index
    %37 = vector.load %arg8[%c0_32, %c512] : memref<128x1440xbf16, #tpu.memory_space<vmem>>, vector<128x512xbf16>
    %cst_33 = arith.constant dense<0.000000e+00> : vector<16x512xf32>
    %38 = tpu.matmul %28, %37, %cst_33 {dimension_numbers = #tpu.dot_dimension_numbers<[1], [0], [0], [1], [0, 0, 1, 1], [], []>} : vector<16x128xbf16>, vector<128x512xbf16>, vector<16x512xf32> -> vector<16x512xf32>
    %c0_34 = arith.constant 0 : index
    %c512_35 = arith.constant 512 : index
    %39 = vector.load %arg9[%c0_34, %c512_35] : memref<1x1440xf32, #tpu.memory_space<vmem>>, vector<1x512xf32>
    %40 = vector.broadcast %39 : vector<1x512xf32> to vector<16x512xf32>
    %41 = arith.addf %38, %40 : vector<16x512xf32>
    %cst_36 = arith.constant 0.000000e+00 : f32
    %42 = vector.broadcast %cst_36 : f32 to vector<16x512xf32>
    %43 = arith.maximumf %41, %42 : vector<16x512xf32>
    %c0_37 = arith.constant 0 : index
    %c512_38 = arith.constant 512 : index
    %44 = vector.load %arg10[%c0_37, %c512_38] : memref<16x1440xf32, #tpu.memory_space<vmem>>, vector<16x512xf32>
    tpu.vector_store %arg10[%c0_37, %c512_38], %43 {strides = array<i32>} : memref<16x1440xf32, #tpu.memory_space<vmem>>, vector<16x512xf32>,
    %c0_39 = arith.constant 0 : index
    %c1024 = arith.constant 1024 : index
    %45 = vector.load %arg8[%c0_39, %c1024] : memref<128x1440xbf16, #tpu.memory_space<vmem>>, vector<128x416xbf16>
    %cst_40 = arith.constant dense<0.000000e+00> : vector<16x416xf32>
    %46 = tpu.matmul %28, %45, %cst_40 {dimension_numbers = #tpu.dot_dimension_numbers<[1], [0], [0], [1], [0, 0, 1, 1], [], []>} : vector<16x128xbf16>, vector<128x416xbf16>, vector<16x416xf32> -> vector<16x416xf32>
    %c0_41 = arith.constant 0 : index
    %c1024_42 = arith.constant 1024 : index
    %47 = vector.load %arg9[%c0_41, %c1024_42] : memref<1x1440xf32, #tpu.memory_space<vmem>>, vector<1x416xf32>
    %48 = vector.broadcast %47 : vector<1x416xf32> to vector<16x416xf32>
    %49 = arith.addf %46, %48 : vector<16x416xf32>
    %cst_43 = arith.constant 0.000000e+00 : f32
    %50 = vector.broadcast %cst_43 : f32 to vector<16x416xf32>
    %51 = arith.maximumf %49, %50 : vector<16x416xf32>
    %c0_44 = arith.constant 0 : index
    %c1024_45 = arith.constant 1024 : index
    %52 = vector.load %arg10[%c0_44, %c1024_45] : memref<16x1440xf32, #tpu.memory_space<vmem>>, vector<16x416xf32>
    tpu.vector_store %arg10[%c0_44, %c1024_45], %51 {strides = array<i32>} : memref<16x1440xf32, #tpu.memory_space<vmem>>, vector<16x416xf32>,
    return
  }
  func.func @transform_0(%arg0: i32) -> (i32, i32) {
    %c0_i32 = arith.constant 0 : i32
    %c0_i32_0 = arith.constant 0 : i32
    return %arg0, %c0_i32 : i32, i32
  }
  func.func @transform_1(%arg0: i32) -> (i32, i32) {
    %c0_i32 = arith.constant 0 : i32
    %c0_i32_0 = arith.constant 0 : i32
    %c0_i32_1 = arith.constant 0 : i32
    return %c0_i32, %c0_i32_0 : i32, i32
  }
  func.func @transform_2(%arg0: i32) -> (i32, i32) {
    %c0_i32 = arith.constant 0 : i32
    %c0_i32_0 = arith.constant 0 : i32
    %c0_i32_1 = arith.constant 0 : i32
    return %c0_i32, %c0_i32_0 : i32, i32
  }
  func.func @transform_3(%arg0: i32) -> (i32, i32) {
    %c0_i32 = arith.constant 0 : i32
    %c0_i32_0 = arith.constant 0 : i32
    %c0_i32_1 = arith.constant 0 : i32
    return %c0_i32, %c0_i32_0 : i32, i32
  }
  func.func @transform_4(%arg0: i32) -> (i32, i32) {
    %c0_i32 = arith.constant 0 : i32
    %c0_i32_0 = arith.constant 0 : i32
    %c0_i32_1 = arith.constant 0 : i32
    return %c0_i32, %c0_i32_0 : i32, i32
  }
  func.func @transform_5(%arg0: i32) -> (i32, i32) {
    %c0_i32 = arith.constant 0 : i32
    %c0_i32_0 = arith.constant 0 : i32
    %c0_i32_1 = arith.constant 0 : i32
    return %c0_i32, %c0_i32_0 : i32, i32
  }
  func.func @transform_6(%arg0: i32) -> (i32, i32) {
    %c0_i32 = arith.constant 0 : i32
    %c0_i32_0 = arith.constant 0 : i32
    %c0_i32_1 = arith.constant 0 : i32
    return %c0_i32, %c0_i32_0 : i32, i32
  }
  func.func @transform_7(%arg0: i32) -> (i32, i32) {
    %c0_i32 = arith.constant 0 : i32
    %c0_i32_0 = arith.constant 0 : i32
    %c0_i32_1 = arith.constant 0 : i32
    return %c0_i32, %c0_i32_0 : i32, i32
  }
  func.func @transform_8(%arg0: i32) -> (i32, i32) {
    %c0_i32 = arith.constant 0 : i32
    %c0_i32_0 = arith.constant 0 : i32
    %c0_i32_1 = arith.constant 0 : i32
    return %c0_i32, %c0_i32_0 : i32, i32
  }
  func.func @transform_9(%arg0: i32) -> (i32, i32) {
    %c0_i32 = arith.constant 0 : i32
    %c0_i32_0 = arith.constant 0 : i32
    return %arg0, %c0_i32 : i32, i32
  }
}

</mosaic_0001>

<bundles_post_ra>
// kernel: tpu_custom_call.1
= control target key start
LH: loop header
LB: loop body
LE: loop exit
PB: predicated region body
PF: predicated region fallthrough
CT: control target
= control target key end

     0   :  { %14 = vsyncpa [#allocation4], 0  ;;  %s4816_s0 = inlined_call_operand.vmem [shape: bf16[32,1440], index: 0, kind: input, shape index: {}]   ;;  %s4817_s1 = inlined_call_operand.vmem [shape: bf16[1536,128], index: 1, kind: input, shape index: {}]   ;;  %s4818_s2 = inlined_call_operand.vmem [shape: f32[1,128], index: 2, kind: input, shape index: {}]   ;;  %s4819_s3 = inlined_call_operand.vmem [shape: bf16[128,128], index: 3, kind: input, shape index: {}]   ;;  %s4820_s4 = inlined_call_operand.vmem [shape: f32[1,128], index: 4, kind: input, shape index: {}]   ;;  %s4821_s5 = inlined_call_operand.vmem [shape: bf16[128,128], index: 5, kind: input, shape index: {}]   ;;  %s4822_s6 = inlined_call_operand.vmem [shape: f32[1,128], index: 6, kind: input, shape index: {}]   ;;  %s4823_s7 = inlined_call_operand.vmem [shape: bf16[128,1440], index: 7, kind: input, shape index: {}]   ;;  %s4824_s8 = inlined_call_operand.vmem [shape: f32[1,1440], index: 8, kind: input, shape index: {}]   ;;  %s4825_s9 = inlined_call_operand.hbm [shape: f32[32,1440], index: 9, kind: output, shape index: {}]  }
   0x1   :  { %16 = vsyncpa [#allocation4 + $0x1], 0  ;;  %s3731_s30 = smov 0   ;;  %s3733_s10 = smov 0  }
   0x2   :  { %s3735_s11 = smov 0   ;;  %s3737_s12 = smov 0  }
   0x3 LB: > { %s3752_s13 = sadd.s32 4294967295, %s3676_s12   ;;  %s2455_s14 = sadd.s32 4294967294, %s3676_s12   ;;  %s3676_s12 = sphi %s3737_s12, %s4833_s12   ;;  %s3672_s11 = sphi %s3735_s11, %s4832_s11   ;;  %s3668_s10 = sphi %s3733_s10, %s4831_s10   ;;  %s3664_s30 = sphi %s3731_s30, %s4830_s30  }
   0x4   : > { %s3756_s15 = sadd.s32 1, %s3676_s12   ;;  %s223_s16 = sadd.s32 1, %s3672_s11 }
   0x5   : > { %s220_s17 = ssub.s32 %s3676_s12, %s3756_s15  ;;  %p233_p0 = scmp.ne.s32.totalorder %s3672_s11, %s3668_s10 }
   0x6   : > { %p221_p1 = scmp.eq.s32.totalorder %s220_s17, 0  ;;  %p234_p2 = scmp.eq.s32.totalorder %s3752_s13, 1 }
   0x7   : > { %p239_p3 = scmp.ne.s32.totalorder %s3668_s10, %s3664_s30  ;;  %p240_p4 = scmp.eq.s32.totalorder %s2455_s14, 1 }
   0x8   : > { %s3767_s18 = scalar_select %p221_p1, %s3672_s11, %s223_s16  }
   0x9   : > { %p3769_p5 = por %p234_p2, %p233_p0  ;;  %p3773_p6 = por %p240_p4, %p239_p3 }
   0xa   : > { %p2458_p7 = scmp.ge.s32.totalorder %s3676_s12, 1  ;;  %p292_p8 = scmp.lt.s32.totalorder %s3676_s12, 3 }
   0xc   : > { %p293_p9 = pnand %p2458_p7, %p292_p8 }
   0xd   : > { %s2459_s27 = sshll.u32 (!%p293_p9), %s3752_s13, 1  ;;  %s326_s29 = sand.u32 (!%p293_p9), 1, %s3668_s10  }
   0xe   : > { %296 = sbr.rel (%p293_p9) target bundleno = 727 (0x2d7), region = 56  ;;  %p330_p10 = scmp.lt.s32.totalorder (!%p293_p9), %s2459_s27, 3 }
   0xf   : > { %s3566_s14 = smul.u32 (!%p293_p9), 192, %s326_s29 }
  0x10   : > { %s3568_s21 = smul.u32 (!%p293_p9), 192, %s3752_s13 }
  0x12   : > { %s2389_s26 = scalar_lea.hbm (!%p293_p9), %s4825_s9, %s3568_s21  ;;  %s3634_s21 = scalar_lea.hbm (!%p293_p9), %s4825_s9, 384 }
  0x13   : > { %v3365_v0 = vld [vmem:[%s4817_s1 + $0x38] sm:$0xff]  ;;  %v3364_v4 = vld [vmem:[%s4817_s1 + $0x30] sm:$0xff]  ;;  %s4835_s27 = smov (!%p330_p10, %s2459_s27), 3  ;;  %v3363_v8 = vld [vmem:[%s4817_s1 + $0x28] sm:$0xff]  ;;  %vm338_vm0 = vcmask 1043712   ;;  %vm358_vm1 = vcmask 1043456  }
  0x14   : > { %v3373_v1 = vld [vmem:[%s4817_s1 + $0x78] sm:$0xff]  ;;  %1212 = vmatpush.bf16.msra.mxu0 %v3365_v0  ;;  %v3372_v5 = vld [vmem:[%s4817_s1 + $0x70] sm:$0xff]  ;;  %v3371_v9 = vld [vmem:[%s4817_s1 + $0x68] sm:$0xff]  ;;  %s3567_s23 = smul.u32 48, %s4835_s27  ;;  %vm359_vm2 = vcmask 261124   ;;  %vm2370_vm4 = vcmask 261120  }
  0x15   : > { %v3381_v2 = vld [vmem:[%s4817_s1 + $0xb8] sm:$0xff]  ;;  %1226 = vmatpush.bf16.msra.mxu1 %v3373_v1  ;;  %v3380_v6 = vld [vmem:[%s4817_s1 + $0xb0] sm:$0xff]  ;;  %v3379_v10 = vld [vmem:[%s4817_s1 + $0xa8] sm:$0xff]  ;;  %s2392_s28 = sshll.u32 %s2389_s26, 4  ;;  %s2393_s28 = int_to_ptr.hbm [resolvable:$true] %s2392_s28 }
  0x16   : > { %v3389_v3 = vld [vmem:[%s4817_s1 + $0xf8] sm:$0xff]  ;;  %1240 = vmatpush.bf16.msra.mxu2 %v3381_v2  ;;  %v3388_v7 = vld [vmem:[%s4817_s1 + $0xf0] sm:$0xff]  ;;  %v3387_v11 = vld [vmem:[%s4817_s1 + $0xe8] sm:$0xff]  ;;  %s3831_s22 = scalar_lea.vmem %s4816_s0, %s3567_s23  ;;  %s4748_s23 = scalar_lea.vmem [#allocation3], %s3566_s14 }
  0x17   : > { %1254 = vmatpush.bf16.msra.mxu3 %v3389_v3  ;;  %v3362_v12 = vld [vmem:[%s4817_s1 + $0x20] sm:$0xff]  ;;  %v3361_v16 = vld [vmem:[%s4817_s1 + $0x18] sm:$0xff]  ;;  %v347_v21 = vld [vmem:[%s3831_s22 + $0x30] sm:$0xff]  ;;  %s2390_s13 = sshll.u32 %s4748_s23, 4  ;;  %s2377_s14 = scalar_lea.sflag [#allocation4], %s326_s29  ;;  %s2391_s13 = int_to_ptr.vmem [resolvable:$true] %s2390_s13 }
  0x18   : > { %1213 = vmatpush.bf16.msra.mxu0 %v3364_v4  ;;  %v3370_v13 = vld [vmem:[%s4817_s1 + $0x60] sm:$0xff]  ;;  %v3369_v17 = vld [vmem:[%s4817_s1 + $0x58] sm:$0xff]  ;;  %v342_v22 = vld [vmem:[%s3831_s22 + $0x8] sm:$0xff]  ;;  %362 = vst [vmem:[#allocation2 + $0x30] sm:$0xff] %v347_v21  ;;  %s3628_s16 = sshra.s32 %s2393_s28, 4  ;;  %s3629_s16 = int_to_ptr.hbm [resolvable:$true] %s3628_s16 }
  0x19   : > { %1227 = vmatpush.bf16.msra.mxu1 %v3372_v5  ;;  %v3378_v14 = vld [vmem:[%s4817_s1 + $0xa0] sm:$0xff]  ;;  %v3377_v18 = vld [vmem:[%s4817_s1 + $0x98] sm:$0xff]  ;;  %v3360_v24 = vld [vmem:[%s4817_s1 + $0x10] sm:$0xff]  ;;  %354 = vst [vmem:[#allocation2 + $0x8] sm:$0xff] %v342_v22  ;;  %p3635_p0 = scmp.lt.s32.totalorder %s3629_s16, %s4825_s9 }
  0x1a   : > { %1241 = vmatpush.bf16.msra.mxu2 %v3380_v6  ;;  %v3386_v15 = vld [vmem:[%s4817_s1 + $0xe0] sm:$0xff]  ;;  %v3385_v19 = vld [vmem:[%s4817_s1 + $0xd8] sm:$0xff]  ;;  %v3368_v25 = vld [vmem:[%s4817_s1 + $0x50] sm:$0xff] }
  0x1b   : > { %1255 = vmatpush.bf16.msra.mxu3 %v3388_v7  ;;  %v341_v20 = vld [vmem:[%s3831_s22] sm:$0xff]  ;;  %v348_v23 = vld [vmem:[%s3831_s22 + $0x38] sm:$0xff]  ;;  %v3376_v26 = vld [vmem:[%s4817_s1 + $0x90] sm:$0xff] }
  0x1c   : > { %1214 = vmatpush.bf16.msra.mxu0 %v3363_v8  ;;  %353 = vst [vmem:[#allocation2] sm:$0xff] %v341_v20  ;;  %v3384_v27 = vld [vmem:[%s4817_s1 + $0xd0] sm:$0xff]  ;;  %v3359_v28 = vld [vmem:[%s4817_s1 + $0x8] sm:$0xff]  ;;  %v349_v31 = vld [vmem:[%s3831_s22 + $0x40] sm:$0xff] }
  0x1d   : > { %1228 = vmatpush.bf16.msra.mxu1 %v3371_v9  ;;  %363 = vst [vmem:[#allocation2 + $0x38] sm:$0xff] %v348_v23  ;;  %v3367_v29 = vld [vmem:[%s4817_s1 + $0x48] sm:$0xff]  ;;  %v343_v30 = vld [vmem:[%s3831_s22 + $0x10] sm:$0xff]  ;;  %v344_v32 = vld [vmem:[%s3831_s22 + $0x18] sm:$0xff] }
  0x1e   : > { %1242 = vmatpush.bf16.msra.mxu2 %v3379_v10  ;;  %v3375_v33 = vld [vmem:[%s4817_s1 + $0x88] sm:$0xff]  ;;  %355 = vst [vmem:[#allocation2 + $0x10] sm:$0xff] %v343_v30  ;;  %v3358_v35 = vld [vmem:[%s4817_s1] sm:$0xff]  ;;  %v3397_v40 = vld [vmem:[%s4817_s1 + $0x138] sm:$0xff] }
  0x1f   : > { %1256 = vmatpush.bf16.msra.mxu3 %v3387_v11  ;;  %v3383_v34 = vld [vmem:[%s4817_s1 + $0xc8] sm:$0xff]  ;;  %364 = vst [vmem:[#allocation2 + $0x40] sm:$0xff] %v349_v31  ;;  %v3366_v37 = vld [vmem:[%s4817_s1 + $0x40] sm:$0xff]  ;;  %v3405_v41 = vld [vmem:[%s4817_s1 + $0x178] sm:$0xff] }
  0x20   : > { %1215 = vmatpush.bf16.msra.mxu0 %v3362_v12  ;;  %v350_v36 = vld [vmem:[%s3831_s22 + $0x48] sm:$0xff]  ;;  %v3374_v38 = vld [vmem:[%s4817_s1 + $0x80] sm:$0xff]  ;;  %356 = vst [vmem:[#allocation2 + $0x18] sm:$0xff] %v344_v32  ;;  %v3352_v44 = vld [vmem:[#allocation2 + $0x2c] sm:$0xf0] }
  0x21   : > { %1229 = vmatpush.bf16.msra.mxu1 %v3370_v13  ;;  %v3382_v39 = vld [vmem:[%s4817_s1 + $0xc0] sm:$0xff]  ;;  %365 = vst [vmem:[#allocation2 + $0x48] sm:$0xff] %v350_v36  ;;  %v2471_v45 = vld [vmem:[#allocation2 + $0x8] sm:$0xf]  ;;  %v2465_v47 = vld [vmem:[#allocation2 + $0x30] sm:$0xf0] }
  0x22   : > { %1243 = vmatpush.bf16.msra.mxu2 %v3378_v14  ;;  %v3347_v48 = vld [vmem:[#allocation2 + $0xc] sm:$0xf]  ;;  %v3413_v50 = vld [vmem:[%s4817_s1 + $0x1b8] sm:$0xff]  ;;  %v3396_v56 = vld [vmem:[%s4817_s1 + $0x130] sm:$0xff] }
  0x23   : > { %1257 = vmatpush.bf16.msra.mxu3 %v3386_v15  ;;  %v2463_v42 = vld [vmem:[#allocation2] sm:$0xf]  ;;  %v3346_v43 = vld [vmem:[#allocation2 + $0x4] sm:$0xf]  ;;  %v3421_v51 = vld [vmem:[%s4817_s1 + $0x1f8] sm:$0xff]  ;;  %v3678_v15 = vmov 0  }
  0x24   : > { %1216 = vmatpush.bf16.msra.mxu0 %v3361_v16  ;;  %v3353_v46 = vld [vmem:[#allocation2 + $0x34] sm:$0xf0]  ;;  %v2473_v49 = vld [vmem:[#allocation2 + $0x38] sm:$0xf0]  ;;  %v2464_v52 = vor.u32 %v3352_v44, %v2463_v42  ;;  %v2468_v54 = vor.u32 %v3346_v43, %v2465_v47  ;;  %v3404_v57 = vld [vmem:[%s4817_s1 + $0x170] sm:$0xff] }
  0x25   : > { %1230 = vmatpush.bf16.msra.mxu1 %v3369_v17  ;;  %v2472_v53 = vor.u32 %v3353_v46, %v2471_v45  ;;  %v2476_v55 = vor.u32 %v3347_v48, %v2473_v49  ;;  %v3412_v58 = vld [vmem:[%s4817_s1 + $0x1b0] sm:$0xff]  ;;  %v3395_v60 = vld [vmem:[%s4817_s1 + $0x128] sm:$0xff]  ;;  %v3394_v0 = vld [vmem:[%s4817_s1 + $0x120] sm:$0xff]  ;;  %339 = vst.msk [vmem:[#allocation2 + $0x2c] sm:$0xf] %vm338_vm0, %v3678_v15 }
  0x26   : > { %1244 = vmatpush.bf16.msra.mxu2 %v3377_v18  ;;  %v3420_v59 = vld [vmem:[%s4817_s1 + $0x1f0] sm:$0xff]  ;;  %v3403_v61 = vld [vmem:[%s4817_s1 + $0x168] sm:$0xff]  ;;  %v3402_v1 = vld [vmem:[%s4817_s1 + $0x160] sm:$0xff]  ;;  %340 = vst.msk [vmem:[#allocation2 + $0x5c] sm:$0xf] %vm338_vm0, %v3678_v15 }
  0x27   : > { %1258 = vmatpush.bf16.msra.mxu3 %v3385_v19  ;;  %v3411_v62 = vld [vmem:[%s4817_s1 + $0x1a8] sm:$0xff]  ;;  %v3410_v2 = vld [vmem:[%s4817_s1 + $0x1a0] sm:$0xff]  ;;  %v3393_v4 = vld [vmem:[%s4817_s1 + $0x118] sm:$0xff] }
  0x28   : > { %1217 = vmatpush.bf16.msra.mxu0 %v3360_v24  ;;  %v3419_v63 = vld [vmem:[%s4817_s1 + $0x1e8] sm:$0xff]  ;;  %v3418_v3 = vld [vmem:[%s4817_s1 + $0x1e0] sm:$0xff]  ;;  %v3401_v5 = vld [vmem:[%s4817_s1 + $0x158] sm:$0xff] }
  0x29   : > { %1231 = vmatpush.bf16.msra.mxu1 %v3368_v25  ;;  %v3409_v6 = vld [vmem:[%s4817_s1 + $0x198] sm:$0xff]  ;;  %v3392_v8 = vld [vmem:[%s4817_s1 + $0x110] sm:$0xff]  ;;  %v3391_v12 = vld [vmem:[%s4817_s1 + $0x108] sm:$0xff] }
  0x2a   : > { %1245 = vmatpush.bf16.msra.mxu2 %v3376_v26  ;;  %v3417_v7 = vld [vmem:[%s4817_s1 + $0x1d8] sm:$0xff]  ;;  %v3400_v9 = vld [vmem:[%s4817_s1 + $0x150] sm:$0xff]  ;;  %v345_v13 = vld [vmem:[%s3831_s22 + $0x20] sm:$0xff] }
  0x2b   : > { %1259 = vmatpush.bf16.msra.mxu3 %v3384_v27  ;;  %v3408_v10 = vld [vmem:[%s4817_s1 + $0x190] sm:$0xff]  ;;  %v3399_v16 = vld [vmem:[%s4817_s1 + $0x148] sm:$0xff]  ;;  %357 = vst [vmem:[#allocation2 + $0x20] sm:$0xff] %v345_v13  ;;  %vm3971_vm3 = vmor %vm359_vm2, %vm358_vm1 }
  0x2c   : > { %1218 = vmatpush.bf16.msra.mxu0 %v3359_v28  ;;  %v3416_v11 = vld [vmem:[%s4817_s1 + $0x1d0] sm:$0xff]  ;;  %v346_v17 = vld [vmem:[%s3831_s22 + $0x28] sm:$0xff]  ;;  %v352_v21 = vld [vmem:[%s3831_s22 + $0x58] sm:$0xff] }
  0x2d   : > { %1232 = vmatpush.bf16.msra.mxu1 %v3367_v29  ;;  %v351_v14 = vld [vmem:[%s3831_s22 + $0x50] sm:$0xff]  ;;  %v3407_v19 = vld [vmem:[%s4817_s1 + $0x188] sm:$0xff]  ;;  %v3390_v22 = vld [vmem:[%s4817_s1 + $0x100] sm:$0xff]  ;;  %361 = vst.msk [vmem:[#allocation2 + $0x28] sm:$0xff] %vm3971_vm3, %v346_v17  ;;  %s3630_s22 = scalar_lea.hbm %s3629_s16, 192 }
  0x2e   : > { %1246 = vmatpush.bf16.msra.mxu2 %v3375_v33  ;;  %v3415_v20 = vld [vmem:[%s4817_s1 + $0x1c8] sm:$0xff]  ;;  %366 = vst [vmem:[#allocation2 + $0x50] sm:$0xff] %v351_v14  ;;  %v3398_v23 = vld [vmem:[%s4817_s1 + $0x140] sm:$0xff]  ;;  %v3429_v26 = vld [vmem:[%s4817_s1 + $0x238] sm:$0xff]  ;;  %p3631_p11 = scmp.ne.s32.totalorder %s3629_s16, %s3630_s22  ;;  %p3636_p1 = scmp.lt.s32.totalorder %s3634_s21, %s3630_s22 }
  0x2f   : > { %1260 = vmatpush.bf16.msra.mxu3 %v3383_v34  ;;  %v3406_v24 = vld [vmem:[%s4817_s1 + $0x180] sm:$0xff]  ;;  %v3437_v27 = vld [vmem:[%s4817_s1 + $0x278] sm:$0xff]  ;;  %v2479_v28 = vld [vmem:[#allocation2 + $0x10] sm:$0xf]  ;;  %367 = vst.msk [vmem:[#allocation2 + $0x58] sm:$0xff] %vm3971_vm3, %v352_v21 }
  0x30   : > { %1219 = vmatpush.bf16.msra.mxu0 %v3358_v35  ;;  %v3414_v25 = vld [vmem:[%s4817_s1 + $0x1c0] sm:$0xff]  ;;  %v2487_v30 = vld [vmem:[#allocation2 + $0x18] sm:$0xf]  ;;  %v3355_v31 = vld [vmem:[#allocation2 + $0x44] sm:$0xf0]  ;;  %p3632_p12 = pnand %p3631_p11, %p3769_p5  ;;  %p3637_p2 = por %p3636_p1, %p3635_p0 }
  0x31   : > { %1233 = vmatpush.bf16.msra.mxu1 %v3366_v37  ;;  %v3354_v29 = vld [vmem:[#allocation2 + $0x3c] sm:$0xf0]  ;;  %v3348_v32 = vld [vmem:[#allocation2 + $0x14] sm:$0xf]  ;;  %v2481_v33 = vld [vmem:[#allocation2 + $0x40] sm:$0xf0] }
  0x32   : > { %1247 = vmatpush.bf16.msra.mxu2 %v3374_v38  ;;  %v3349_v34 = vld [vmem:[#allocation2 + $0x1c] sm:$0xf]  ;;  %v2489_v35 = vld [vmem:[#allocation2 + $0x48] sm:$0xf0]  ;;  %v2480_v38 = vor.u32 %v3354_v29, %v2479_v28  ;;  %v3428_v42 = vld [vmem:[%s4817_s1 + $0x230] sm:$0xff]  ;;  %p3633_p13 = pneg %p3632_p12 }
  0x33   : > { %1261 = vmatpush.bf16.msra.mxu3 %v3382_v39  ;;  %1220 = vmatmul.bf16.vlgmr.msra.gmra.mxu0 %v2464_v52  ;;  %v3445_v36 = vld [vmem:[%s4817_s1 + $0x2b8] sm:$0xff]  ;;  %v2488_v39 = vor.u32 %v3355_v31, %v2487_v30  ;;  %v3436_v43 = vld [vmem:[%s4817_s1 + $0x270] sm:$0xff]  ;;  %v3427_v46 = vld [vmem:[%s4817_s1 + $0x228] sm:$0xff] }
  0x34   : > { %1268 = vmatpush.bf16.msrb.mxu0 %v3397_v40  ;;  %1234 = vmatmul.bf16.vlgmr.msra.gmra.mxu1 %v2468_v54  ;;  %v3453_v37 = vld [vmem:[%s4817_s1 + $0x2f8] sm:$0xff]  ;;  %v2484_v40 = vor.u32 %v3348_v32, %v2481_v33  ;;  %v3444_v44 = vld [vmem:[%s4817_s1 + $0x2b0] sm:$0xff]  ;;  %v3435_v47 = vld [vmem:[%s4817_s1 + $0x268] sm:$0xff]  ;;  %p3638_p3 = pnand %p3637_p2, %p3633_p13 }
  0x35   : > { %1282 = vmatpush.bf16.msrb.mxu1 %v3405_v41  ;;  %1248 = vmatmul.bf16.vlgmr.msra.gmra.mxu2 %v2472_v53  ;;  %v2492_v41 = vor.u32 %v3349_v34, %v2489_v35  ;;  %v3452_v45 = vld [vmem:[%s4817_s1 + $0x2f0] sm:$0xff]  ;;  %v3443_v48 = vld [vmem:[%s4817_s1 + $0x2a8] sm:$0xff]  ;;  %v3442_v52 = vld [vmem:[%s4817_s1 + $0x2a0] sm:$0xff] }
  0x36   : > { %1296 = vmatpush.bf16.msrb.mxu2 %v3413_v50  ;;  %1262 = vmatmul.bf16.vlgmr.msra.gmra.mxu3 %v2476_v55  ;;  %v3451_v49 = vld [vmem:[%s4817_s1 + $0x2e8] sm:$0xff]  ;;  %v3426_v50 = vld [vmem:[%s4817_s1 + $0x220] sm:$0xff]  ;;  %v3425_v54 = vld [vmem:[%s4817_s1 + $0x218] sm:$0xff] }
  0x37   : > { %1310 = vmatpush.bf16.msrb.mxu3 %v3421_v51  ;;  %v3434_v51 = vld [vmem:[%s4817_s1 + $0x260] sm:$0xff]  ;;  %v3433_v55 = vld [vmem:[%s4817_s1 + $0x258] sm:$0xff]  ;;  %v3456_v33 = vld [vmem:[%s4819_s3 + $0x10] sm:$0xff] }
  0x38   : > { %1269 = vmatpush.bf16.msrb.mxu0 %v3396_v56  ;;  %v3450_v53 = vld [vmem:[%s4817_s1 + $0x2e0] sm:$0xff]  ;;  %v3441_v56 = vld [vmem:[%s4817_s1 + $0x298] sm:$0xff] }
  0x39   : > { %1283 = vmatpush.bf16.msrb.mxu1 %v3404_v57  ;;  %v3449_v57 = vld [vmem:[%s4817_s1 + $0x2d8] sm:$0xff] }
  0x3a   : > { %1297 = vmatpush.bf16.msrb.mxu2 %v3412_v58  ;;  %v3424_v58 = vld [vmem:[%s4817_s1 + $0x210] sm:$0xff]  ;;  %v2505_v13 = vld [vmem:[#allocation2 + $0x58] sm:$0xf0] }
  0x3b   : > { %1311 = vmatpush.bf16.msrb.mxu3 %v3420_v59  ;;  %v3432_v59 = vld [vmem:[%s4817_s1 + $0x250] sm:$0xff]  ;;  %v3461_v18 = vld [vmem:[%s4819_s3 + $0x38] sm:$0xff] }
  0x3c   : > { %1270 = vmatpush.bf16.msrb.mxu0 %v3395_v60  ;;  %v3440_v60 = vld [vmem:[%s4817_s1 + $0x290] sm:$0xff]  ;;  %v3457_v29 = vld [vmem:[%s4819_s3 + $0x18] sm:$0xff] }
  0x3d   : > { %1284 = vmatpush.bf16.msrb.mxu1 %v3403_v61  ;;  %v3448_v61 = vld [vmem:[%s4817_s1 + $0x2d0] sm:$0xff] }
  0x3e   : > { %1298 = vmatpush.bf16.msrb.mxu2 %v3411_v62  ;;  %v3423_v62 = vld [vmem:[%s4817_s1 + $0x208] sm:$0xff] }
  0x3f   : > { %1312 = vmatpush.bf16.msrb.mxu3 %v3419_v63  ;;  %v3431_v63 = vld [vmem:[%s4817_s1 + $0x248] sm:$0xff] }
  0x40   : > { %1271 = vmatpush.bf16.msrb.mxu0 %v3394_v0  ;;  %v3439_v0 = vld [vmem:[%s4817_s1 + $0x288] sm:$0xff] }
  0x41   : > { %1285 = vmatpush.bf16.msrb.mxu1 %v3402_v1  ;;  %v3447_v1 = vld [vmem:[%s4817_s1 + $0x2c8] sm:$0xff] }
  0x42   : > { %1299 = vmatpush.bf16.msrb.mxu2 %v3410_v2  ;;  %v3422_v2 = vld [vmem:[%s4817_s1 + $0x200] sm:$0xff] }
  0x43   : > { %1313 = vmatpush.bf16.msrb.mxu3 %v3418_v3  ;;  %v3430_v3 = vld [vmem:[%s4817_s1 + $0x240] sm:$0xff] }
  0x44   : > { %1272 = vmatpush.bf16.msrb.mxu0 %v3393_v4  ;;  %v3438_v4 = vld [vmem:[%s4817_s1 + $0x280] sm:$0xff] }
  0x45   : > { %1286 = vmatpush.bf16.msrb.mxu1 %v3401_v5  ;;  %v3446_v5 = vld [vmem:[%s4817_s1 + $0x2c0] sm:$0xff] }
  0x46   : > { %1300 = vmatpush.bf16.msrb.mxu2 %v3409_v6  ;;  %v2495_v6 = vld [vmem:[#allocation2 + $0x20] sm:$0xf] }
  0x47   : > { %1314 = vmatpush.bf16.msrb.mxu3 %v3417_v7  ;;  %v3350_v7 = vld [vmem:[#allocation2 + $0x24] sm:$0xf] }
  0x48   : > { %1273 = vmatpush.bf16.msrb.mxu0 %v3392_v8  ;;  %v3356_v8 = vld [vmem:[#allocation2 + $0x4c] sm:$0xf0] }
  0x49   : > { %1287 = vmatpush.bf16.msrb.mxu1 %v3400_v9  ;;  %v2497_v9 = vld [vmem:[#allocation2 + $0x50] sm:$0xf0]  ;;  %v2496_v14 = vor.u32 %v3356_v8, %v2495_v6 }
  0x4a   : > { %1301 = vmatpush.bf16.msrb.mxu2 %v3408_v10  ;;  %v2503_v10 = vld [vmem:[#allocation2 + $0x28] sm:$0xf]  ;;  %v2500_v15 = vor.u32 %v3350_v7, %v2497_v9 }
  0x4b   : > { %1315 = vmatpush.bf16.msrb.mxu3 %v3416_v11  ;;  %v3357_v11 = vld [vmem:[#allocation2 + $0x54] sm:$0xf0] }
  0x4c   : > { %1274 = vmatpush.bf16.msrb.mxu0 %v3391_v12  ;;  %v3351_v12 = vld [vmem:[#allocation2 + $0x2c] sm:$0xf] }
  0x4d   : > { %1288 = vmatpush.bf16.msrb.mxu1 %v3399_v16  ;;  %v2504_v16 = vor.u32 %v3357_v11, %v2503_v10  ;;  %v2508_v17 = vor.u32 %v3351_v12, %v2505_v13 }
  0x4e   : > { %1302 = vmatpush.bf16.msrb.mxu2 %v3407_v19  ;;  %v3460_v19 = vld [vmem:[%s4819_s3 + $0x30] sm:$0xff] }
  0x4f   : > { %1316 = vmatpush.bf16.msrb.mxu3 %v3415_v20 }
  0x50   : > { %1275 = vmatpush.bf16.msrb.mxu0 %v3390_v22  ;;  %v3459_v22 = vld [vmem:[%s4819_s3 + $0x28] sm:$0xff] }
  0x51   : > { %1289 = vmatpush.bf16.msrb.mxu1 %v3398_v23 }
  0x52   : > { %1303 = vmatpush.bf16.msrb.mxu2 %v3406_v24 }
  0x53   : > { %1317 = vmatpush.bf16.msrb.mxu3 %v3414_v25  ;;  %1276 = vmatmul.bf16.vlgmr.msrb.gmra.mxu0 %v2480_v38  ;;  %v3458_v25 = vld [vmem:[%s4819_s3 + $0x20] sm:$0xff] }
  0x54   : > { %1324 = vmatpush.bf16.msra.mxu0 %v3429_v26  ;;  %1290 = vmatmul.bf16.vlgmr.msrb.gmra.mxu1 %v2484_v40  ;;  %v3611_v26 = vld [vmem:[%s4818_s2] ss:$0 sm:$0xff] }
  0x55   : > { %1338 = vmatpush.bf16.msra.mxu1 %v3437_v27  ;;  %1304 = vmatmul.bf16.vlgmr.msrb.gmra.mxu2 %v2488_v39 }
  0x56   : > { %1352 = vmatpush.bf16.msra.mxu2 %v3445_v36  ;;  %1318 = vmatmul.bf16.vlgmr.msrb.gmra.mxu3 %v2492_v41  ;;  %v3454_v41 = vld [vmem:[%s4819_s3] sm:$0xff] }
  0x57   : > { %1366 = vmatpush.bf16.msra.mxu3 %v3453_v37  ;;  %v3455_v37 = vld [vmem:[%s4819_s3 + $0x8] sm:$0xff] }
  0x58   : > { %1325 = vmatpush.bf16.msra.mxu0 %v3428_v42 }
  0x59   : > { %1339 = vmatpush.bf16.msra.mxu1 %v3436_v43 }
  0x5a   : > { %1353 = vmatpush.bf16.msra.mxu2 %v3444_v44 }
  0x5b   : > { %1367 = vmatpush.bf16.msra.mxu3 %v3452_v45 }
  0x5c   : > { %1326 = vmatpush.bf16.msra.mxu0 %v3427_v46 }
  0x5d   : > { %1340 = vmatpush.bf16.msra.mxu1 %v3435_v47 }
  0x5e   : > { %1354 = vmatpush.bf16.msra.mxu2 %v3443_v48  ;;  %v3469_v48 = vld [vmem:[%s4821_s5 + $0x38] sm:$0xff] }
  0x5f   : > { %1368 = vmatpush.bf16.msra.mxu3 %v3451_v49 }
  0x60   : > { %1327 = vmatpush.bf16.msra.mxu0 %v3426_v50  ;;  %v3468_v50 = vld [vmem:[%s4821_s5 + $0x30] sm:$0xff] }
  0x61   : > { %1341 = vmatpush.bf16.msra.mxu1 %v3434_v51 }
  0x62   : > { %1355 = vmatpush.bf16.msra.mxu2 %v3442_v52 }
  0x63   : > { %1369 = vmatpush.bf16.msra.mxu3 %v3450_v53 }
  0x64   : > { %1328 = vmatpush.bf16.msra.mxu0 %v3425_v54  ;;  %v3467_v54 = vld [vmem:[%s4821_s5 + $0x28] sm:$0xff] }
  0x65   : > { %1342 = vmatpush.bf16.msra.mxu1 %v3433_v55 }
  0x66   : > { %1356 = vmatpush.bf16.msra.mxu2 %v3441_v56 }
  0x67   : > { %1370 = vmatpush.bf16.msra.mxu3 %v3449_v57 }
  0x68   : > { %1329 = vmatpush.bf16.msra.mxu0 %v3424_v58 }
  0x69   : > { %1343 = vmatpush.bf16.msra.mxu1 %v3432_v59 }
  0x6a   : > { %1357 = vmatpush.bf16.msra.mxu2 %v3440_v60  ;;  %v3466_v60 = vld [vmem:[%s4821_s5 + $0x20] sm:$0xff] }
  0x6b   : > { %1371 = vmatpush.bf16.msra.mxu3 %v3448_v61 }
  0x6c   : > { %1330 = vmatpush.bf16.msra.mxu0 %v3423_v62 }
  0x6d   : > { %1344 = vmatpush.bf16.msra.mxu1 %v3431_v63 }
  0x6e   : > { %1358 = vmatpush.bf16.msra.mxu2 %v3439_v0 }
  0x6f   : > { %1372 = vmatpush.bf16.msra.mxu3 %v3447_v1 }
  0x70   : > { %1331 = vmatpush.bf16.msra.mxu0 %v3422_v2 }
  0x71   : > { %1345 = vmatpush.bf16.msra.mxu1 %v3430_v3 }
  0x72   : > { %1359 = vmatpush.bf16.msra.mxu2 %v3438_v4 }
  0x73   : > { %1373 = vmatpush.bf16.msra.mxu3 %v3446_v5  ;;  %1332 = vmatmul.bf16.vlgmr.msra.gmra.mxu0 %v2496_v14 }
  0x74   : > { %1346 = vmatmul.bf16.vlgmr.msra.gmra.mxu1 %v2500_v15  ;;  %1451 = vmatpush.bf16.msrb.mxu0 %v3461_v18  ;;  %v3465_v18 = vld [vmem:[%s4821_s5 + $0x18] sm:$0xff] }
  0x75   : > { %1360 = vmatmul.bf16.vlgmr.msra.gmra.mxu2 %v2504_v16  ;;  %1536 = vmatpush.bf16.msrb.mxu1 %v3469_v48  ;;  %v3490_v48 = vld [vmem:[%s4823_s7 + $0x1e4] sm:$0xf] }
  0x76   : > { %1374 = vmatmul.bf16.vlgmr.msra.gmra.mxu3 %v2508_v17 }
  0x78   : > { %1452 = vmatpush.bf16.msrb.mxu0 %v3460_v19  ;;  %v3464_v19 = vld [vmem:[%s4821_s5 + $0x10] sm:$0xff] }
  0x79   : > { %1537 = vmatpush.bf16.msrb.mxu1 %v3468_v50  ;;  %v3047_v50 = vld [vmem:[%s4823_s7 + $0x1e8] sm:$0xf] }
  0x7c   : > { %1453 = vmatpush.bf16.msrb.mxu0 %v3459_v22  ;;  %v3071_v22 = vld [vmem:[%s4823_s7 + $0x2a0] sm:$0xf] }
  0x7d   : > { %1538 = vmatpush.bf16.msrb.mxu1 %v3467_v54  ;;  %v3049_v54 = vld [vmem:[%s4823_s7 + $0x218] sm:$0xf0] }
  0x80   : > { %1454 = vmatpush.bf16.msrb.mxu0 %v3458_v25 }
  0x81   : > { %1539 = vmatpush.bf16.msrb.mxu1 %v3466_v60 }
  0x84   : > { %1455 = vmatpush.bf16.msrb.mxu0 %v3457_v29 }
  0x85   : > { %1540 = vmatpush.bf16.msrb.mxu1 %v3465_v18  ;;  %v3480_v18 = vld [vmem:[%s4823_s7 + $0xec] sm:$0xf0] }
  0x88   : > { %1456 = vmatpush.bf16.msrb.mxu0 %v3456_v33  ;;  %v3055_v33 = vld [vmem:[%s4823_s7 + $0x240] sm:$0xf] }
  0x89   : > { %1541 = vmatpush.bf16.msrb.mxu1 %v3464_v19  ;;  %v3478_v19 = vld [vmem:[%s4823_s7 + $0xc4] sm:$0xf] }
  0x8c   : > { %1457 = vmatpush.bf16.msrb.mxu0 %v3455_v37  ;;  %v3057_v37 = vld [vmem:[%s4823_s7 + $0x270] sm:$0xf0] }
  0x90   : > { %1458 = vmatpush.bf16.msrb.mxu0 %v3454_v41  ;;  %v3497_v41 = vld [vmem:[%s4823_s7 + $0x274] sm:$0xf0] }
  0xb0   : > { %v1221_v20 = vpop.f32.mrf.mxu0 }
  0xb1   : > { %v1235_v21 = vpop.f32.mrf.mxu1  ;;  %v1222_v30 = vadd.f32 %v3611_v26, %v1221_v20  ;;  %v3463_v20 = vld [vmem:[%s4821_s5 + $0x8] sm:$0xff] }
  0xb2   : > { %1542 = vmatpush.bf16.msrb.mxu1 %v3463_v20 }
  0xb3   : > { %v1236_v34 = vadd.f32 %v1235_v21, %v1222_v30  ;;  %v3462_v21 = vld [vmem:[%s4821_s5] sm:$0xff] }
  0xb6   : > { %1543 = vmatpush.bf16.msrb.mxu1 %v3462_v21 }
  0xb8   : > { %v1249_v23 = vpop.f32.mrf.mxu2  ;;  %v1223_v27 = vpop.f32.mrf.mxu0 }
  0xb9   : > { %v1263_v24 = vpop.f32.mrf.mxu3  ;;  %v1237_v28 = vpop.f32.mrf.mxu1  ;;  %v1224_v35 = vadd.f32 %v3611_v26, %v1223_v27  ;;  %v1250_v38 = vadd.f32 %v1249_v23, %v1236_v34  ;;  %v3500_v23 = vld [vmem:[%s4823_s7 + $0x2cc] sm:$0xf0]  ;;  %v3073_v26 = vld [vmem:[%s4823_s7 + $0x2d0] sm:$0xf0]  ;;  %v3079_v27 = vld [vmem:[%s4823_s7 + $0x2a8] sm:$0xf] }
  0xba   : > { %v3072_v25 = vor.u32 %v3500_v23, %v3071_v22  ;;  %v2993_v22 = vld [vmem:[%s4823_s7 + $0xf0] sm:$0xf0]  ;;  %v2999_v23 = vld [vmem:[%s4823_s7 + $0xc8] sm:$0xf] }
  0xbb   : > { %v1238_v40 = vadd.f32 %v1237_v28, %v1224_v35  ;;  %v1264_v42 = vadd.f32 %v1263_v24, %v1250_v38  ;;  %v3498_v24 = vld [vmem:[%s4823_s7 + $0x2a4] sm:$0xf]  ;;  %v3501_v28 = vld [vmem:[%s4823_s7 + $0x2d4] sm:$0xf0]  ;;  %v3496_v35 = vld [vmem:[%s4823_s7 + $0x26c] sm:$0xf0] }
  0xbc   : > { %v3076_v29 = vor.u32 %v3498_v24, %v3073_v26  ;;  %v3080_v30 = vor.u32 %v3501_v28, %v3079_v27  ;;  %1755 = vmatpush.bf16.msrb.mxu2 %v3072_v25  ;;  %v3056_v38 = vor.u32 %v3496_v35, %v3055_v33  ;;  %v3481_v24 = vld [vmem:[%s4823_s7 + $0xf4] sm:$0xf0]  ;;  %v3479_v25 = vld [vmem:[%s4823_s7 + $0xcc] sm:$0xf]  ;;  %v3001_v26 = vld [vmem:[%s4823_s7 + $0xf8] sm:$0xf0] }
  0xbd   : > { %v3612_v27 = vld [vmem:[%s4820_s4] ss:$0 sm:$0xff]  ;;  %v3474_v33 = vld [vmem:[%s4823_s7 + $0x64] sm:$0xf]  ;;  %v2977_v35 = vld [vmem:[%s4823_s7 + $0x90] sm:$0xf0] }
  0xbe   : > { %1769 = vmatpush.bf16.msrb.mxu3 %v3076_v29  ;;  %1783 = vmatpush.bf16.msra.mxu0 %v3080_v30  ;;  %v2996_v29 = vor.u32 %v3478_v19, %v2993_v22  ;;  %v3000_v30 = vor.u32 %v3481_v24, %v2999_v23  ;;  %v3522_v24 = vld [vmem:[%s4823_s7 + $0x1f4] sm:$0xf] }
  0xc0   : > { %v1251_v31 = vpop.f32.mrf.mxu2  ;;  %1756 = vmatpush.bf16.msrb.mxu2 %v3056_v38  ;;  %v3475_v38 = vld [vmem:[%s4823_s7 + $0x6c] sm:$0xf] }
  0xc1   : > { %v1265_v32 = vpop.f32.mrf.mxu3  ;;  %v1252_v45 = vadd.f32 %v1251_v31, %v1238_v40  ;;  %v3499_v31 = vld [vmem:[%s4823_s7 + $0x2ac] sm:$0xf]  ;;  %v3063_v40 = vld [vmem:[%s4823_s7 + $0x248] sm:$0xf] }
  0xc3   : > { %v1266_v49 = vadd.f32 %v1265_v32, %v1252_v45  ;;  %v3081_v32 = vld [vmem:[%s4823_s7 + $0x2d8] sm:$0xf0]  ;;  %v3039_v45 = vld [vmem:[%s4823_s7 + $0x1e0] sm:$0xf] }
  0xc4   : > { %v3084_v34 = vor.u32 %v3499_v31, %v3081_v32  ;;  %v2975_v31 = vld [vmem:[%s4823_s7 + $0x60] sm:$0xf]  ;;  %v3476_v32 = vld [vmem:[%s4823_s7 + $0x8c] sm:$0xf0] }
  0xc6   : > { %1797 = vmatpush.bf16.msra.mxu1 %v3084_v34  ;;  %v3004_v34 = vor.u32 %v3479_v25, %v3001_v26  ;;  %v3169_v25 = vld [vmem:[%s4823_s7 + $0x220] sm:$0xf0]  ;;  %v3175_v26 = vld [vmem:[%s4823_s7 + $0x1f8] sm:$0xf] }
  0xd0   : > { %v1277_v36 = vpop.f32.mrf.mxu0 }
  0xd1   : > { %v1291_v39 = vpop.f32.mrf.mxu1  ;;  %v1278_v46 = vadd.f32 %v1277_v36, %v1264_v42  ;;  %v3494_v36 = vld [vmem:[%s4823_s7 + $0x244] sm:$0xf]  ;;  %v3495_v42 = vld [vmem:[%s4823_s7 + $0x24c] sm:$0xf] }
  0xd3   : > { %v1292_v52 = vadd.f32 %v1291_v39, %v1278_v46  ;;  %v3060_v39 = vor.u32 %v3494_v36, %v3057_v37  ;;  %v3492_v46 = vld [vmem:[%s4823_s7 + $0x20c] sm:$0xf0]  ;;  %v2983_v36 = vld [vmem:[%s4823_s7 + $0x68] sm:$0xf]  ;;  %v3477_v37 = vld [vmem:[%s4823_s7 + $0x94] sm:$0xf0] }
  0xd5   : > { %1770 = vmatpush.bf16.msrb.mxu3 %v3060_v39  ;;  %v2985_v39 = vld [vmem:[%s4823_s7 + $0x98] sm:$0xf0] }
  0xd8   : > { %v1305_v43 = vpop.f32.mrf.mxu2  ;;  %v1279_v47 = vpop.f32.mrf.mxu0 }
  0xd9   : > { %v1319_v44 = vpop.f32.mrf.mxu3  ;;  %v1293_v51 = vpop.f32.mrf.mxu1  ;;  %v1280_v53 = vadd.f32 %v1279_v47, %v1266_v49  ;;  %v1306_v57 = vadd.f32 %v1305_v43, %v1292_v52  ;;  %v3064_v43 = vor.u32 %v3497_v41, %v3063_v40  ;;  %v3041_v49 = vld [vmem:[%s4823_s7 + $0x210] sm:$0xf0]  ;;  %v3493_v52 = vld [vmem:[%s4823_s7 + $0x214] sm:$0xf0]  ;;  %v2976_v40 = vor.u32 %v3476_v32, %v2975_v31  ;;  %v2959_v41 = vld [vmem:[%s4823_s7] sm:$0xf] }
  0xda   : > { %v3172_v31 = vor.u32 %v3522_v24, %v3169_v25  ;;  %v3151_v32 = vld [vmem:[%s4823_s7 + $0x190] sm:$0xf]  ;;  %v3505_v24 = vld [vmem:[%s4823_s7 + $0x44] sm:$0xf0] }
  0xdb   : > { %v1294_v59 = vadd.f32 %v1293_v51, %v1280_v53  ;;  %v1320_v62 = vadd.f32 %v1319_v44, %v1306_v57  ;;  %v3065_v44 = vld [vmem:[%s4823_s7 + $0x278] sm:$0xf0]  ;;  %v3040_v51 = vor.u32 %v3492_v46, %v3039_v45  ;;  %v3491_v53 = vld [vmem:[%s4823_s7 + $0x1ec] sm:$0xf]  ;;  %1784 = vmatpush.bf16.msra.mxu0 %v3064_v43  ;;  %v3023_v57 = vld [vmem:[%s4823_s7 + $0x180] sm:$0xf]  ;;  %v2984_v45 = vor.u32 %v3477_v37, %v2983_v36 }
  0xdc   : > { %v3068_v47 = vor.u32 %v3495_v42, %v3065_v44  ;;  %v3052_v60 = vor.u32 %v3491_v53, %v3049_v54  ;;  %v3472_v42 = vld [vmem:[%s4823_s7 + $0x2c] sm:$0xf0]  ;;  %v2980_v44 = vor.u32 %v3474_v33, %v2977_v35  ;;  %v3470_v46 = vld [vmem:[%s4823_s7 + $0x4] sm:$0xf]  ;;  %v2969_v53 = vld [vmem:[%s4823_s7 + $0x38] sm:$0xf0] }
  0xdd   : > { %1757 = vmatpush.bf16.msrb.mxu2 %v3040_v51  ;;  %v3473_v51 = vld [vmem:[%s4823_s7 + $0x34] sm:$0xf0]  ;;  %v3520_v33 = vld [vmem:[%s4823_s7 + $0x1bc] sm:$0xf0]  ;;  %v3518_v36 = vld [vmem:[%s4823_s7 + $0x194] sm:$0xf] }
  0xde   : > { %1798 = vmatpush.bf16.msra.mxu1 %v3068_v47  ;;  %v2961_v47 = vld [vmem:[%s4823_s7 + $0x30] sm:$0xf0]  ;;  %v3153_v37 = vld [vmem:[%s4823_s7 + $0x1c0] sm:$0xf0] }
  0xe0   : > { %v1307_v55 = vpop.f32.mrf.mxu2 }
  0xe1   : > { %v1321_v56 = vpop.f32.mrf.mxu3  ;;  %v1308_v63 = vadd.f32 %v1307_v55, %v1294_v59  ;;  %v3044_v55 = vor.u32 %v3490_v48, %v3041_v49  ;;  %v3486_v59 = vld [vmem:[%s4823_s7 + $0x184] sm:$0xf]  ;;  %v2967_v48 = vld [vmem:[%s4823_s7 + $0x8] sm:$0xf] }
  0xe2   : > { %1799 = vmatpush.bf16.msra.mxu1 %v3052_v60  ;;  %v3207_v60 = vld [vmem:[%s4823_s7 + $0x2b8] sm:$0xf] }
  0xe3   : > { %v1322_v3 = vadd.f32 %v1321_v56, %v1308_v63  ;;  %v3048_v56 = vor.u32 %v3493_v52, %v3047_v50  ;;  %v3489_v63 = vld [vmem:[%s4823_s7 + $0x1b4] sm:$0xf0]  ;;  %1771 = vmatpush.bf16.msrb.mxu3 %v3044_v55  ;;  %v2988_v50 = vor.u32 %v3475_v38, %v2985_v39  ;;  %v3471_v52 = vld [vmem:[%s4823_s7 + $0xc] sm:$0xf]  ;;  %v3199_v55 = vld [vmem:[%s4823_s7 + $0x2b0] sm:$0xf] }
  0xe4   : > { %v3159_v38 = vld [vmem:[%s4823_s7 + $0x198] sm:$0xf]  ;;  %v3521_v39 = vld [vmem:[%s4823_s7 + $0x1c4] sm:$0xf0] }
  0xe5   : > { %1785 = vmatpush.bf16.msra.mxu0 %v3048_v56  ;;  %v3532_v56 = vld [vmem:[%s4823_s7 + $0x2dc] sm:$0xf0] }
  0xf0   : > { %v1333_v58 = vpop.f32.mrf.mxu0 }
  0xf1   : > { %v1347_v61 = vpop.f32.mrf.mxu1  ;;  %v1334_v0 = vadd.f32 %v1333_v58, %v1320_v62  ;;  %v3488_v58 = vld [vmem:[%s4823_s7 + $0x1ac] sm:$0xf0]  ;;  %v3031_v62 = vld [vmem:[%s4823_s7 + $0x188] sm:$0xf] }
  0xf3   : > { %v1348_v5 = vadd.f32 %v1347_v61, %v1334_v0  ;;  %v3025_v61 = vld [vmem:[%s4823_s7 + $0x1b0] sm:$0xf0]  ;;  %v3487_v0 = vld [vmem:[%s4823_s7 + $0x18c] sm:$0xf] }
  0xf8   : > { %v1361_v1 = vpop.f32.mrf.mxu2  ;;  %v1335_v4 = vpop.f32.mrf.mxu0 }
  0xf9   : > { %v1375_v2 = vpop.f32.mrf.mxu3  ;;  %v1336_v6 = vadd.f32 %v1335_v4, %v1322_v3  ;;  %v1362_v7 = vadd.f32 %v1361_v1, %v1348_v5  ;;  %v1349_v8 = vpop.f32.mrf.mxu1  ;;  %v3033_v1 = vld [vmem:[%s4823_s7 + $0x1b8] sm:$0xf0]  ;;  %v3028_v3 = vor.u32 %v3486_v59, %v3025_v61  ;;  %v3032_v4 = vor.u32 %v3489_v63, %v3031_v62  ;;  %v3007_v5 = vld [vmem:[%s4823_s7 + $0x120] sm:$0xf]  ;;  %v3201_v59 = vld [vmem:[%s4823_s7 + $0x2e0] sm:$0xf0] }
  0xfa   : > { %v3533_v61 = vld [vmem:[%s4823_s7 + $0x2e4] sm:$0xf0] }
  0xfb   : > { %v1350_v9 = vadd.f32 %v1349_v8, %v1336_v6  ;;  %v1376_v11 = vadd.f32 %v1375_v2, %v1362_v7  ;;  %v3024_v2 = vor.u32 %v3488_v58, %v3023_v57  ;;  %v3484_v6 = vld [vmem:[%s4823_s7 + $0x14c] sm:$0xf0]  ;;  %v3482_v7 = vld [vmem:[%s4823_s7 + $0x124] sm:$0xf]  ;;  %v3036_v8 = vor.u32 %v3487_v0, %v3033_v1  ;;  %1772 = vmatpush.bf16.msrb.mxu3 %v3028_v3  ;;  %v3530_v57 = vld [vmem:[%s4823_s7 + $0x2b4] sm:$0xf] }
  0xfc   : > { %1786 = vmatpush.bf16.msra.mxu0 %v3032_v4  ;;  %v2960_v58 = vor.u32 %v3472_v42, %v2959_v41  ;;  %v2964_v0 = vor.u32 %v3470_v46, %v2961_v47  ;;  %v3531_v1 = vld [vmem:[%s4823_s7 + $0x2bc] sm:$0xf]  ;;  %v2968_v3 = vor.u32 %v3473_v51, %v2967_v48  ;;  %v2972_v4 = vor.u32 %v3471_v52, %v2969_v53  ;;  %v3161_v41 = vld [vmem:[%s4823_s7 + $0x1c8] sm:$0xf0]  ;;  %v3135_v46 = vld [vmem:[%s4823_s7 + $0x130] sm:$0xf] }
  0xfd   : > { %v1380_v15 = vmax.f32 %v1376_v11, 0.0  ;;  %v3485_v11 = vld [vmem:[%s4823_s7 + $0x154] sm:$0xf0]  ;;  %1758 = vmatpush.bf16.msrb.mxu2 %v3024_v2  ;;  %1800 = vmatpush.bf16.msra.mxu1 %v3036_v8  ;;  %v3209_v2 = vld [vmem:[%s4823_s7 + $0x2e8] sm:$0xf0]  ;;  %v3152_v42 = vor.u32 %v3520_v33, %v3151_v32 }
  0xfe   : > { %v3183_v8 = vld [vmem:[%s4823_s7 + $0x250] sm:$0xf]  ;;  %v3516_v47 = vld [vmem:[%s4823_s7 + $0x15c] sm:$0xf0]  ;;  %v3514_v48 = vld [vmem:[%s4823_s7 + $0x134] sm:$0xf] }
  0xff   : > { %v3143_v51 = vld [vmem:[%s4823_s7 + $0x138] sm:$0xf]  ;;  %v3517_v52 = vld [vmem:[%s4823_s7 + $0x164] sm:$0xf0] }
 0x100   : > { %v1363_v10 = vpop.f32.mrf.mxu2 }
 0x101   : > { %v1364_v12 = vadd.f32 %v1363_v10, %v1350_v9  ;;  %v1377_v13 = vpop.f32.mrf.mxu3  ;;  %v3009_v9 = vld [vmem:[%s4823_s7 + $0x150] sm:$0xf0]  ;;  %v3015_v10 = vld [vmem:[%s4823_s7 + $0x128] sm:$0xf] }
 0x103   : > { %v1378_v14 = vadd.f32 %v1377_v13, %v1364_v12  ;;  %v3483_v12 = vld [vmem:[%s4823_s7 + $0x12c] sm:$0xf]  ;;  %v3017_v13 = vld [vmem:[%s4823_s7 + $0x158] sm:$0xf0] }
 0x104   : > { %v3020_v21 = vor.u32 %v3483_v12, %v3017_v13  ;;  %v3526_v12 = vld [vmem:[%s4823_s7 + $0x254] sm:$0xf]  ;;  %v3185_v13 = vld [vmem:[%s4823_s7 + $0x280] sm:$0xf0] }
 0x105   : > { %v1381_v16 = vmax.f32 %v1378_v14, 0.0  ;;  %v3008_v14 = vor.u32 %v3484_v6, %v3007_v5  ;;  %v3200_v6 = vor.u32 %v3532_v56, %v3199_v55  ;;  %v3188_v19 = vor.u32 %v3526_v12, %v3185_v13  ;;  %v3515_v55 = vld [vmem:[%s4823_s7 + $0x13c] sm:$0xf]  ;;  %v3145_v56 = vld [vmem:[%s4823_s7 + $0x168] sm:$0xf0] }
 0x106   : > { %1801 = vmatpush.bf16.msra.mxu1 %v3020_v21  ;;  %v3524_v21 = vld [vmem:[%s4823_s7 + $0x21c] sm:$0xf0]  ;;  %v3509_v12 = vld [vmem:[%s4823_s7 + $0xa4] sm:$0xf0] }
 0x107   : > { %v1382_v17 = vpack.c.bf16 %v1381_v16, %v1380_v15  ;;  %v3012_v15 = vor.u32 %v3482_v7, %v3009_v9  ;;  %v3016_v16 = vor.u32 %v3485_v11, %v3015_v10  ;;  %1759 = vmatpush.bf16.msrb.mxu2 %v3008_v14  ;;  %v3204_v7 = vor.u32 %v3530_v57, %v3201_v59  ;;  %v3528_v9 = vld [vmem:[%s4823_s7 + $0x27c] sm:$0xf0]  ;;  %v3191_v14 = vld [vmem:[%s4823_s7 + $0x258] sm:$0xf] }
 0x108   : > { %v3208_v10 = vor.u32 %v3533_v61, %v3207_v60  ;;  %v3212_v11 = vor.u32 %v3531_v1, %v3209_v2  ;;  %v3148_v57 = vor.u32 %v3515_v55, %v3145_v56  ;;  %v3512_v59 = vld [vmem:[%s4823_s7 + $0xfc] sm:$0xf0]  ;;  %v3510_v60 = vld [vmem:[%s4823_s7 + $0xd4] sm:$0xf]  ;;  %v3561_v55 = vld [vmem:[%s4823_s7 + $0x294] sm:$0xf0] }
 0x109   : > { %1459 = vmatmul.bf16.vlgmr.msrb.gmra.mxu0 %v1382_v17  ;;  %v2991_v17 = vld [vmem:[%s4823_s7 + $0xc0] sm:$0xf]  ;;  %1773 = vmatpush.bf16.msrb.mxu3 %v3012_v15  ;;  %v3529_v15 = vld [vmem:[%s4823_s7 + $0x284] sm:$0xf0]  ;;  %v3559_v56 = vld [vmem:[%s4823_s7 + $0x26c] sm:$0xf] }
 0x10a   : > { %v2992_v28 = vor.u32 %v3480_v18, %v2991_v17  ;;  %1787 = vmatpush.bf16.msra.mxu0 %v3016_v16  ;;  %1802 = vmatpush.bf16.msra.mxu1 %v3004_v34  ;;  %v3527_v16 = vld [vmem:[%s4823_s7 + $0x25c] sm:$0xf]  ;;  %v3193_v17 = vld [vmem:[%s4823_s7 + $0x288] sm:$0xf0]  ;;  %v3184_v18 = vor.u32 %v3528_v9, %v3183_v8  ;;  %v3192_v22 = vor.u32 %v3529_v15, %v3191_v14  ;;  %v3506_v8 = vld [vmem:[%s4823_s7 + $0x74] sm:$0xf] }
 0x10b   : > { %v3196_v23 = vor.u32 %v3527_v16, %v3193_v17  ;;  %v3507_v15 = vld [vmem:[%s4823_s7 + $0x7c] sm:$0xf]  ;;  %v3113_v16 = vld [vmem:[%s4823_s7 + $0xa8] sm:$0xf0] }
 0x10c   : > { %1760 = vmatpush.bf16.msrb.mxu2 %v2992_v28  ;;  %v3523_v28 = vld [vmem:[%s4823_s7 + $0x1fc] sm:$0xf]  ;;  %v3116_v17 = vor.u32 %v3507_v15, %v3113_v16  ;;  %v3553_v15 = vld [vmem:[%s4823_s7 + $0x1d4] sm:$0xf0]  ;;  %v3551_v16 = vld [vmem:[%s4823_s7 + $0x1ac] sm:$0xf] }
 0x10d   : > { %1774 = vmatpush.bf16.msrb.mxu3 %v2996_v29  ;;  %v3177_v29 = vld [vmem:[%s4823_s7 + $0x228] sm:$0xf0] }
 0x10e   : > { %1788 = vmatpush.bf16.msra.mxu0 %v3000_v30  ;;  %1803 = vmatpush.bf16.msra.mxu1 %v2988_v50  ;;  %v3180_v35 = vor.u32 %v3523_v28, %v3177_v29  ;;  %v3137_v50 = vld [vmem:[%s4823_s7 + $0x160] sm:$0xf0]  ;;  %v3097_v28 = vld [vmem:[%s4823_s7 + $0x48] sm:$0xf0] }
 0x10f   : > { %v3140_v53 = vor.u32 %v3514_v48, %v3137_v50  ;;  %v3311_v48 = vld [vmem:[%s4823_s7 + $0x260] sm:$0xf] }
 0x110   : > { %1761 = vmatpush.bf16.msrb.mxu2 %v2976_v40  ;;  %v3519_v40 = vld [vmem:[%s4823_s7 + $0x19c] sm:$0xf] }
 0x111   : > { %1775 = vmatpush.bf16.msrb.mxu3 %v2980_v44  ;;  %v3160_v44 = vor.u32 %v3521_v39, %v3159_v38  ;;  %v3329_v38 = vld [vmem:[%s4823_s7 + $0x2f0] sm:$0xf0]  ;;  %v3335_v39 = vld [vmem:[%s4823_s7 + $0x2c8] sm:$0xf] }
 0x112   : > { %1789 = vmatpush.bf16.msra.mxu0 %v2984_v45  ;;  %1804 = vmatpush.bf16.msra.mxu1 %v2972_v4  ;;  %v3164_v45 = vor.u32 %v3519_v40, %v3161_v41  ;;  %v3129_v4 = vld [vmem:[%s4823_s7 + $0x108] sm:$0xf0]  ;;  %v3565_v40 = vld [vmem:[%s4823_s7 + $0x2f4] sm:$0xf0] }
 0x113   : > { %v3336_v50 = vor.u32 %v3565_v40, %v3335_v39  ;;  %v3545_v39 = vld [vmem:[%s4823_s7 + $0x114] sm:$0xf0]  ;;  %v3543_v40 = vld [vmem:[%s4823_s7 + $0xec] sm:$0xf] }
 0x114   : > { %1762 = vmatpush.bf16.msrb.mxu2 %v2960_v58  ;;  %v3119_v58 = vld [vmem:[%s4823_s7 + $0xd0] sm:$0xf] }
 0x115   : > { %1776 = vmatpush.bf16.msrb.mxu3 %v2964_v0  ;;  %v3120_v61 = vor.u32 %v3512_v59, %v3119_v58  ;;  %v3513_v0 = vld [vmem:[%s4823_s7 + $0x104] sm:$0xf0] }
 0x116   : > { %1790 = vmatpush.bf16.msra.mxu0 %v2968_v3  ;;  %v3511_v3 = vld [vmem:[%s4823_s7 + $0xdc] sm:$0xf] }
 0x118   : > { %2029 = vmatpush.bf16.msra.mxu2 %v3200_v6  ;;  %v3103_v6 = vld [vmem:[%s4823_s7 + $0x70] sm:$0xf] }
 0x119   : > { %2043 = vmatpush.bf16.msra.mxu3 %v3204_v7  ;;  %v3508_v7 = vld [vmem:[%s4823_s7 + $0x9c] sm:$0xf0] }
 0x11a   : > { %2057 = vmatpush.bf16.msrb.mxu0 %v3208_v10  ;;  %v3104_v9 = vor.u32 %v3508_v7, %v3103_v6  ;;  %v3105_v10 = vld [vmem:[%s4823_s7 + $0xa0] sm:$0xf0] }
 0x11b   : > { %v3108_v13 = vor.u32 %v3506_v8, %v3105_v10  ;;  %v3279_v8 = vld [vmem:[%s4823_s7 + $0x1a0] sm:$0xf] }
 0x11c   : > { %2030 = vmatpush.bf16.msra.mxu2 %v3184_v18  ;;  %v3087_v18 = vld [vmem:[%s4823_s7 + $0x10] sm:$0xf] }
 0x11d   : > { %2044 = vmatpush.bf16.msra.mxu3 %v3188_v19  ;;  %v3504_v19 = vld [vmem:[%s4823_s7 + $0x3c] sm:$0xf0] }
 0x11e   : > { %2058 = vmatpush.bf16.msrb.mxu0 %v3192_v22  ;;  %v3089_v22 = vld [vmem:[%s4823_s7 + $0x40] sm:$0xf0] }
 0x121   : > { %2045 = vmatpush.bf16.msra.mxu3 %v3172_v31  ;;  %v3613_v31 = vld [vmem:[%s4822_s6] ss:$0 sm:$0xff] }
 0x186   : > { %v1460_v20 = vpop.f32.mrf.mxu0 }
 0x187   : > { %v1461_v43 = vadd.f32 %v3612_v27, %v1460_v20  ;;  %v3167_v20 = vld [vmem:[%s4823_s7 + $0x1f0] sm:$0xf] }
 0x188   : > { %v3168_v30 = vor.u32 %v3524_v21, %v3167_v20  ;;  %v3502_v20 = vld [vmem:[%s4823_s7 + $0x14] sm:$0xf]  ;;  %v3088_v21 = vor.u32 %v3504_v19, %v3087_v18 }
 0x189   : > { %v1465_v62 = vmax.f32 %v1461_v43, 0.0  ;;  %v3156_v43 = vor.u32 %v3518_v36, %v3153_v37  ;;  %v3092_v25 = vor.u32 %v3502_v20, %v3089_v22  ;;  %v3564_v36 = vld [vmem:[%s4823_s7 + $0x2ec] sm:$0xf0]  ;;  %v3562_v37 = vld [vmem:[%s4823_s7 + $0x2c4] sm:$0xf] }
 0x18a   : > { %2031 = vmatpush.bf16.msra.mxu2 %v3168_v30  ;;  %v3263_v20 = vld [vmem:[%s4823_s7 + $0x140] sm:$0xf] }
 0x18b   : > { %2046 = vmatpush.bf16.msra.mxu3 %v3156_v43  ;;  %v3563_v43 = vld [vmem:[%s4823_s7 + $0x2cc] sm:$0xf] }
 0x18e   : > { %v1462_v49 = vpop.f32.mrf.mxu0  ;;  %2032 = vmatpush.bf16.msra.mxu2 %v3152_v42 }
 0x18f   : > { %v1463_v54 = vadd.f32 %v3612_v27, %v1462_v49  ;;  %v3525_v27 = vld [vmem:[%s4823_s7 + $0x224] sm:$0xf0]  ;;  %v3136_v49 = vor.u32 %v3516_v47, %v3135_v46  ;;  %2047 = vmatpush.bf16.msra.mxu3 %v3140_v53  ;;  %v3332_v47 = vor.u32 %v3562_v37, %v3329_v38  ;;  %v3313_v53 = vld [vmem:[%s4823_s7 + $0x290] sm:$0xf0] }
 0x190   : > { %v3176_v34 = vor.u32 %v3525_v27, %v3175_v26  ;;  %v3503_v27 = vld [vmem:[%s4823_s7 + $0x1c] sm:$0xf]  ;;  %v3249_v37 = vld [vmem:[%s4823_s7 + $0x110] sm:$0xf0]  ;;  %v3255_v38 = vld [vmem:[%s4823_s7 + $0xe8] sm:$0xf] }
 0x191   : > { %v1466_v63 = vmax.f32 %v1463_v54, 0.0  ;;  %v3144_v54 = vor.u32 %v3517_v52, %v3143_v51  ;;  %v3100_v29 = vor.u32 %v3503_v27, %v3097_v28  ;;  %v3558_v52 = vld [vmem:[%s4823_s7 + $0x264] sm:$0xf]  ;;  %v3549_v27 = vld [vmem:[%s4823_s7 + $0x174] sm:$0xf0] }
 0x192   : > { %2059 = vmatpush.bf16.msrb.mxu0 %v3176_v34  ;;  %2033 = vmatpush.bf16.msra.mxu2 %v3136_v49  ;;  %v3560_v49 = vld [vmem:[%s4823_s7 + $0x28c] sm:$0xf0]  ;;  %v3316_v59 = vor.u32 %v3558_v52, %v3313_v53  ;;  %v3547_v28 = vld [vmem:[%s4823_s7 + $0x14c] sm:$0xf]  ;;  %v3541_v52 = vld [vmem:[%s4823_s7 + $0xb4] sm:$0xf0] }
 0x193   : > { %v1467_v5 = vpack.c.bf16 %v1466_v63, %v1465_v62  ;;  %v3121_v62 = vld [vmem:[%s4823_s7 + $0x100] sm:$0xf0]  ;;  %v3127_v63 = vld [vmem:[%s4823_s7 + $0xd8] sm:$0xf]  ;;  %v3312_v58 = vor.u32 %v3560_v49, %v3311_v48  ;;  %v3539_v53 = vld [vmem:[%s4823_s7 + $0x8c] sm:$0xf] }
 0x194   : > { %v3124_v1 = vor.u32 %v3510_v60, %v3121_v62  ;;  %v3128_v2 = vor.u32 %v3513_v0, %v3127_v63  ;;  %v3295_v60 = vld [vmem:[%s4823_s7 + $0x200] sm:$0xf]  ;;  %v3554_v0 = vld [vmem:[%s4823_s7 + $0x204] sm:$0xf] }
 0x195   : > { %1544 = vmatmul.bf16.vlgmr.msrb.gmra.mxu1 %v1467_v5  ;;  %v3132_v5 = vor.u32 %v3511_v3, %v3129_v4  ;;  %v3557_v3 = vld [vmem:[%s4823_s7 + $0x234] sm:$0xf0]  ;;  %v3555_v4 = vld [vmem:[%s4823_s7 + $0x20c] sm:$0xf]  ;;  %v3538_v49 = vld [vmem:[%s4823_s7 + $0x84] sm:$0xf] }
 0x196   : > { %2071 = vmatpush.bf16.msrb.mxu1 %v3212_v11  ;;  %2060 = vmatpush.bf16.msrb.mxu0 %v3160_v44  ;;  %v3111_v11 = vld [vmem:[%s4823_s7 + $0x78] sm:$0xf]  ;;  %v3337_v44 = vld [vmem:[%s4823_s7 + $0x2f8] sm:$0xf0] }
 0x197   : > { %2034 = vmatpush.bf16.msra.mxu2 %v3120_v61  ;;  %2048 = vmatpush.bf16.msra.mxu3 %v3124_v1  ;;  %v3112_v14 = vor.u32 %v3509_v12, %v3111_v11  ;;  %v3340_v51 = vor.u32 %v3563_v43, %v3337_v44  ;;  %v3556_v61 = vld [vmem:[%s4823_s7 + $0x22c] sm:$0xf0]  ;;  %v3297_v1 = vld [vmem:[%s4823_s7 + $0x230] sm:$0xf0]  ;;  %v3550_v12 = vld [vmem:[%s4823_s7 + $0x1a4] sm:$0xf] }
 0x198   : > { %v3296_v6 = vor.u32 %v3556_v61, %v3295_v60  ;;  %v3300_v7 = vor.u32 %v3554_v0, %v3297_v1  ;;  %v3231_v44 = vld [vmem:[%s4823_s7 + $0x80] sm:$0xf]  ;;  %v3534_v61 = vld [vmem:[%s4823_s7 + $0x24] sm:$0xf]  ;;  %v3537_v0 = vld [vmem:[%s4823_s7 + $0x54] sm:$0xf0] }
 0x199   : > { %v3535_v1 = vld [vmem:[%s4823_s7 + $0x2c] sm:$0xf] }
 0x19a   : > { %2072 = vmatpush.bf16.msrb.mxu1 %v3196_v23  ;;  %2061 = vmatpush.bf16.msrb.mxu0 %v3144_v54  ;;  %v3095_v23 = vld [vmem:[%s4823_s7 + $0x18] sm:$0xf]  ;;  %v3319_v54 = vld [vmem:[%s4823_s7 + $0x268] sm:$0xf] }
 0x19b   : > { %2035 = vmatpush.bf16.msra.mxu2 %v3104_v9  ;;  %2049 = vmatpush.bf16.msra.mxu3 %v3108_v13  ;;  %v3096_v26 = vor.u32 %v3505_v24, %v3095_v23  ;;  %v3320_v62 = vor.u32 %v3561_v55, %v3319_v54  ;;  %v3552_v9 = vld [vmem:[%s4823_s7 + $0x1cc] sm:$0xf0]  ;;  %v3281_v13 = vld [vmem:[%s4823_s7 + $0x1d0] sm:$0xf0]  ;;  %v3546_v24 = vld [vmem:[%s4823_s7 + $0x144] sm:$0xf] }
 0x19c   : > { %v3280_v18 = vor.u32 %v3552_v9, %v3279_v8  ;;  %v3284_v19 = vor.u32 %v3550_v12, %v3281_v13  ;;  %v3241_v54 = vld [vmem:[%s4823_s7 + $0xb8] sm:$0xf0] }
 0x19d   : > { %v3244_v60 = vor.u32 %v3539_v53, %v3241_v54 }
 0x19e   : > { %2073 = vmatpush.bf16.msrb.mxu1 %v3180_v35  ;;  %2062 = vmatpush.bf16.msrb.mxu0 %v3128_v2  ;;  %v3327_v35 = vld [vmem:[%s4823_s7 + $0x2c0] sm:$0xf]  ;;  %v3303_v2 = vld [vmem:[%s4823_s7 + $0x208] sm:$0xf] }
 0x19f   : > { %2036 = vmatpush.bf16.msra.mxu2 %v3088_v21  ;;  %2050 = vmatpush.bf16.msra.mxu3 %v3092_v25  ;;  %v3328_v46 = vor.u32 %v3564_v36, %v3327_v35  ;;  %v3304_v10 = vor.u32 %v3557_v3, %v3303_v2  ;;  %v3548_v21 = vld [vmem:[%s4823_s7 + $0x16c] sm:$0xf0]  ;;  %v3265_v25 = vld [vmem:[%s4823_s7 + $0x170] sm:$0xf0]  ;;  %v3542_v36 = vld [vmem:[%s4823_s7 + $0xe4] sm:$0xf] }
 0x1a0   : > { %v3252_v43 = vor.u32 %v3542_v36, %v3249_v37  ;;  %v3225_v2 = vld [vmem:[%s4823_s7 + $0x58] sm:$0xf0] }
 0x1a2   : > { %2074 = vmatpush.bf16.msrb.mxu1 %v3164_v45  ;;  %2063 = vmatpush.bf16.msrb.mxu0 %v3112_v14  ;;  %v3287_v14 = vld [vmem:[%s4823_s7 + $0x1a8] sm:$0xf] }
 0x1a3   : > { %v3288_v22 = vor.u32 %v3553_v15, %v3287_v14 }
 0x1a6   : > { %2075 = vmatpush.bf16.msrb.mxu1 %v3148_v57  ;;  %2064 = vmatpush.bf16.msrb.mxu0 %v3096_v26  ;;  %v3321_v57 = vld [vmem:[%s4823_s7 + $0x298] sm:$0xf0]  ;;  %v3271_v26 = vld [vmem:[%s4823_s7 + $0x148] sm:$0xf] }
 0x1a7   : > { %v3324_v63 = vor.u32 %v3559_v56, %v3321_v57  ;;  %v3215_v57 = vld [vmem:[%s4823_s7 + $0x20] sm:$0xf] }
 0x1aa   : > { %2076 = vmatpush.bf16.msrb.mxu1 %v3132_v5  ;;  %v3305_v5 = vld [vmem:[%s4823_s7 + $0x238] sm:$0xf0] }
 0x1ab   : > { %v3308_v11 = vor.u32 %v3555_v4, %v3305_v5 }
 0x1ae   : > { %2077 = vmatpush.bf16.msrb.mxu1 %v3116_v17  ;;  %v3289_v17 = vld [vmem:[%s4823_s7 + $0x1d8] sm:$0xf0] }
 0x1af   : > { %v3292_v23 = vor.u32 %v3551_v16, %v3289_v17 }
 0x1b2   : > { %2078 = vmatpush.bf16.msrb.mxu1 %v3100_v29  ;;  %v3273_v29 = vld [vmem:[%s4823_s7 + $0x178] sm:$0xf0] }
 0x1b3   : > { %v3276_v35 = vor.u32 %v3547_v28, %v3273_v29 }
 0x212   : > { %v1545_v30 = vpop.f32.mrf.mxu1 }
 0x213   : > { %v1546_v32 = vadd.f32 %v3613_v31, %v1545_v30  ;;  %v3264_v30 = vor.u32 %v3548_v21, %v3263_v20 }
 0x215   : > { %v1550_v41 = vmax.f32 %v1546_v32, 0.0  ;;  %v3247_v32 = vld [vmem:[%s4823_s7 + $0xe0] sm:$0xf] }
 0x21a   : > { %v1547_v33 = vpop.f32.mrf.mxu1 }
 0x21b   : > { %v1548_v34 = vadd.f32 %v3613_v31, %v1547_v33  ;;  %v3268_v31 = vor.u32 %v3546_v24, %v3265_v25  ;;  %v3544_v33 = vld [vmem:[%s4823_s7 + $0x10c] sm:$0xf0] }
 0x21d   : > { %v1551_v42 = vmax.f32 %v1548_v34, 0.0  ;;  %v3272_v34 = vor.u32 %v3549_v27, %v3271_v26  ;;  %v1859_v27 = vld [vmem:[%s4824_s8 + $0x4] sm:$0xf] }
 0x21f   : > { %v4560_v45 = vpack.c.bf16 %v1551_v42, %v1550_v41  ;;  %v3257_v41 = vld [vmem:[%s4823_s7 + $0x118] sm:$0xf0]  ;;  %v3248_v42 = vor.u32 %v3544_v33, %v3247_v32  ;;  %v1863_v32 = vperm.slane %v1859_v27, 2  ;;  %v1864_v33 = vperm.slane %v1859_v27, 3 }
 0x220   : > { %v3260_v48 = vor.u32 %v3543_v40, %v3257_v41 }
 0x221   : > { %1763 = vmatmul.bf16.vlgmr.msrb.gmra.mxu2 %v4560_v45  ;;  %1777 = vmatmul.bf16.vlgmr.msrb.gmra.mxu3 %v4560_v45 }
 0x222   : > { %1791 = vmatmul.bf16.vlgmr.msra.gmra.mxu0 %v4560_v45  ;;  %1805 = vmatmul.bf16.vlgmr.msra.gmra.mxu1 %v4560_v45 }
 0x223   : > { %2303 = vmatpush.bf16.msrb.mxu2 %v3328_v46  ;;  %2317 = vmatpush.bf16.msrb.mxu3 %v3332_v47  ;;  %v3540_v46 = vld [vmem:[%s4823_s7 + $0xac] sm:$0xf0]  ;;  %v3256_v47 = vor.u32 %v3545_v39, %v3255_v38 }
 0x224   : > { %2331 = vmatpush.bf16.msra.mxu0 %v3336_v50  ;;  %2345 = vmatpush.bf16.msra.mxu1 %v3340_v51  ;;  %v3233_v50 = vld [vmem:[%s4823_s7 + $0xb0] sm:$0xf0]  ;;  %v3239_v51 = vld [vmem:[%s4823_s7 + $0x88] sm:$0xf]  ;;  %v3232_v55 = vor.u32 %v3540_v46, %v3231_v44 }
 0x225   : > { %v3236_v56 = vor.u32 %v3538_v49, %v3233_v50 }
 0x227   : > { %2304 = vmatpush.bf16.msrb.mxu2 %v3312_v58  ;;  %2318 = vmatpush.bf16.msrb.mxu3 %v3316_v59  ;;  %v3536_v58 = vld [vmem:[%s4823_s7 + $0x4c] sm:$0xf0]  ;;  %v3240_v59 = vor.u32 %v3541_v52, %v3239_v51 }
 0x228   : > { %2332 = vmatpush.bf16.msra.mxu0 %v3320_v62  ;;  %2346 = vmatpush.bf16.msra.mxu1 %v3324_v63  ;;  %v3217_v62 = vld [vmem:[%s4823_s7 + $0x50] sm:$0xf0]  ;;  %v3223_v63 = vld [vmem:[%s4823_s7 + $0x28] sm:$0xf]  ;;  %v3216_v3 = vor.u32 %v3536_v58, %v3215_v57 }
 0x229   : > { %v3220_v4 = vor.u32 %v3534_v61, %v3217_v62  ;;  %v3224_v5 = vor.u32 %v3537_v0, %v3223_v63 }
 0x22b   : > { %2305 = vmatpush.bf16.msrb.mxu2 %v3296_v6  ;;  %2319 = vmatpush.bf16.msrb.mxu3 %v3300_v7  ;;  %v3228_v6 = vor.u32 %v3535_v1, %v3225_v2  ;;  %v1585_v7 = vld [vmem:[%s4824_s8] sm:$0xf] }
 0x22c   : > { %2333 = vmatpush.bf16.msra.mxu0 %v3304_v10  ;;  %2347 = vmatpush.bf16.msra.mxu1 %v3308_v11  ;;  %v1589_v8 = vperm.slane %v1585_v7, 2  ;;  %v1590_v9 = vperm.slane %v1585_v7, 3  ;;  %v1587_v14 = vperm.slane %v1585_v7, 0  ;;  %v1588_v15 = vperm.slane %v1585_v7, 1 }
 0x22f   : > { %2306 = vmatpush.bf16.msrb.mxu2 %v3280_v18  ;;  %2320 = vmatpush.bf16.msrb.mxu3 %v3284_v19 }
 0x230   : > { %2334 = vmatpush.bf16.msra.mxu0 %v3288_v22  ;;  %2348 = vmatpush.bf16.msra.mxu1 %v3292_v23 }
 0x231   : > { %2037 = vmatmul.bf16.vlgmr.msra.gmra.mxu2 %v4560_v45  ;;  %2051 = vmatmul.bf16.vlgmr.msra.gmra.mxu3 %v4560_v45 }
 0x232   : > { %2065 = vmatmul.bf16.vlgmr.msrb.gmra.mxu0 %v4560_v45  ;;  %2079 = vmatmul.bf16.vlgmr.msrb.gmra.mxu1 %v4560_v45 }
 0x233   : > { %2307 = vmatpush.bf16.msrb.mxu2 %v3264_v30  ;;  %2321 = vmatpush.bf16.msrb.mxu3 %v3268_v31 }
 0x234   : > { %2335 = vmatpush.bf16.msra.mxu0 %v3272_v34  ;;  %2349 = vmatpush.bf16.msra.mxu1 %v3276_v35 }
 0x237   : > { %2308 = vmatpush.bf16.msrb.mxu2 %v3248_v42  ;;  %2322 = vmatpush.bf16.msrb.mxu3 %v3252_v43  ;;  %v1861_v42 = vperm.slane %v1859_v27, 0  ;;  %v1862_v43 = vperm.slane %v1859_v27, 1 }
 0x238   : > { %2336 = vmatpush.bf16.msra.mxu0 %v3256_v47  ;;  %2350 = vmatpush.bf16.msra.mxu1 %v3260_v48 }
 0x23b   : > { %2309 = vmatpush.bf16.msrb.mxu2 %v3232_v55  ;;  %2323 = vmatpush.bf16.msrb.mxu3 %v3236_v56 }
 0x23c   : > { %2337 = vmatpush.bf16.msra.mxu0 %v3240_v59  ;;  %2351 = vmatpush.bf16.msra.mxu1 %v3244_v60  ;;  %v2133_v59 = vld [vmem:[%s4824_s8 + $0x8] sm:$0xf] }
 0x23d   : > { %v2137_v0 = vperm.slane %v2133_v59, 2  ;;  %v2138_v1 = vperm.slane %v2133_v59, 3 }
 0x23f   : > { %2310 = vmatpush.bf16.msrb.mxu2 %v3216_v3  ;;  %2324 = vmatpush.bf16.msrb.mxu3 %v3220_v4 }
 0x240   : > { %2338 = vmatpush.bf16.msra.mxu0 %v3224_v5  ;;  %2352 = vmatpush.bf16.msra.mxu1 %v3228_v6 }
 0x242   : > { %2311 = vmatmul.bf16.vlgmr.msrb.gmra.mxu2 %v4560_v45  ;;  %2325 = vmatmul.bf16.vlgmr.msrb.gmra.mxu3 %v4560_v45 }
 0x243   : > { %2339 = vmatmul.bf16.vlgmr.msra.gmra.mxu0 %v4560_v45  ;;  %2353 = vmatmul.bf16.vlgmr.msra.gmra.mxu1 %v4560_v45 }
 0x29f   : > { %v1792_v10 = vpop.f32.mrf.mxu0  ;;  %v1806_v11 = vpop.f32.mrf.mxu1 }
 0x2a0   : > { %v1793_v12 = vadd.f32 %v1792_v10, %v1589_v8  ;;  %v1807_v13 = vadd.f32 %v1806_v11, %v1590_v9 }
 0x2a2   : > { %v1813_v16 = vmax.f32 %v1793_v12, 0.0  ;;  %v1814_v17 = vmax.f32 %v1807_v13, 0.0 }
 0x2a4   : > { %1821 = vst [vmem:[%s4748_s23 + $0x10] sm:$0xff] %v1813_v16  ;;  %v1764_v45 = vpop.f32.mrf.mxu2  ;;  %v1778_v18 = vpop.f32.mrf.mxu3 }
 0x2a5   : > { %1822 = vst [vmem:[%s4748_s23 + $0x18] sm:$0xff] %v1814_v17  ;;  %v1765_v19 = vadd.f32 %v1764_v45, %v1587_v14  ;;  %v1779_v20 = vadd.f32 %v1778_v18, %v1588_v15 }
 0x2a7   : > { %v1811_v21 = vmax.f32 %v1765_v19, 0.0  ;;  %v1812_v22 = vmax.f32 %v1779_v20, 0.0  ;;  %v1794_v23 = vpop.f32.mrf.mxu0  ;;  %v1808_v24 = vpop.f32.mrf.mxu1 }
 0x2a8   : > { %v1795_v25 = vadd.f32 %v1794_v23, %v1589_v8  ;;  %v1809_v26 = vadd.f32 %v1808_v24, %v1590_v9  ;;  %v2135_v8 = vperm.slane %v2133_v59, 0  ;;  %v2136_v9 = vperm.slane %v2133_v59, 1 }
 0x2a9   : > { %1819 = vst [vmem:[%s4748_s23] sm:$0xff] %v1811_v21 }
 0x2aa   : > { %1820 = vst [vmem:[%s4748_s23 + $0x8] sm:$0xff] %v1812_v22  ;;  %v1817_v28 = vmax.f32 %v1795_v25, 0.0  ;;  %v1818_v29 = vmax.f32 %v1809_v26, 0.0 }
 0x2ac   : > { %1825 = vst [vmem:[%s4748_s23 + $0x70] sm:$0xff] %v1817_v28  ;;  %v1766_v30 = vpop.f32.mrf.mxu2  ;;  %v1780_v31 = vpop.f32.mrf.mxu3 }
 0x2ad   : > { %1826 = vst [vmem:[%s4748_s23 + $0x78] sm:$0xff] %v1818_v29  ;;  %v1767_v34 = vadd.f32 %v1766_v30, %v1587_v14  ;;  %v1781_v35 = vadd.f32 %v1780_v31, %v1588_v15 }
 0x2af   : > { %v1815_v36 = vmax.f32 %v1767_v34, 0.0  ;;  %v1816_v37 = vmax.f32 %v1781_v35, 0.0  ;;  %v2066_v38 = vpop.f32.mrf.mxu0  ;;  %v2080_v39 = vpop.f32.mrf.mxu1 }
 0x2b0   : > { %v2067_v40 = vadd.f32 %v2066_v38, %v1863_v32  ;;  %v2081_v41 = vadd.f32 %v2080_v39, %v1864_v33 }
 0x2b1   : > { %1823 = vst [vmem:[%s4748_s23 + $0x60] sm:$0xff] %v1815_v36 }
 0x2b2   : > { %1824 = vst [vmem:[%s4748_s23 + $0x68] sm:$0xff] %v1816_v37  ;;  %v2087_v44 = vmax.f32 %v2067_v40, 0.0  ;;  %v2088_v46 = vmax.f32 %v2081_v41, 0.0 }
 0x2b4   : > { %2095 = vst [vmem:[%s4748_s23 + $0x30] sm:$0xff] %v2087_v44  ;;  %v2038_v47 = vpop.f32.mrf.mxu2  ;;  %v2052_v48 = vpop.f32.mrf.mxu3 }
 0x2b5   : > { %2096 = vst [vmem:[%s4748_s23 + $0x38] sm:$0xff] %v2088_v46  ;;  %v2039_v49 = vadd.f32 %v2038_v47, %v1861_v42  ;;  %v2053_v50 = vadd.f32 %v2052_v48, %v1862_v43 }
 0x2b7   : > { %v2085_v51 = vmax.f32 %v2039_v49, 0.0  ;;  %v2086_v52 = vmax.f32 %v2053_v50, 0.0  ;;  %v2068_v53 = vpop.f32.mrf.mxu0  ;;  %v2082_v54 = vpop.f32.mrf.mxu1 }
 0x2b8   : > { %v2069_v55 = vadd.f32 %v2068_v53, %v1863_v32  ;;  %v2083_v56 = vadd.f32 %v2082_v54, %v1864_v33 }
 0x2b9   : > { %2093 = vst [vmem:[%s4748_s23 + $0x20] sm:$0xff] %v2085_v51 }
 0x2ba   : > { %2094 = vst [vmem:[%s4748_s23 + $0x28] sm:$0xff] %v2086_v52  ;;  %v2091_v57 = vmax.f32 %v2069_v55, 0.0  ;;  %v2092_v58 = vmax.f32 %v2083_v56, 0.0 }
 0x2bc   : > { %2099 = vst [vmem:[%s4748_s23 + $0x90] sm:$0xff] %v2091_v57  ;;  %v2040_v60 = vpop.f32.mrf.mxu2  ;;  %v2054_v61 = vpop.f32.mrf.mxu3 }
 0x2bd   : > { %2100 = vst [vmem:[%s4748_s23 + $0x98] sm:$0xff] %v2092_v58  ;;  %v2041_v62 = vadd.f32 %v2040_v60, %v1861_v42  ;;  %v2055_v63 = vadd.f32 %v2054_v61, %v1862_v43 }
 0x2bf   : > { %v2089_v2 = vmax.f32 %v2041_v62, 0.0  ;;  %v2090_v3 = vmax.f32 %v2055_v63, 0.0 }
 0x2c0   : > { %v2340_v4 = vpop.f32.mrf.mxu0  ;;  %v2354_v5 = vpop.f32.mrf.mxu1 }
 0x2c1   : > { %2097 = vst [vmem:[%s4748_s23 + $0x80] sm:$0xff] %v2089_v2  ;;  %v2341_v6 = vadd.f32 %v2340_v4, %v2137_v0  ;;  %v2355_v7 = vadd.f32 %v2354_v5, %v2138_v1 }
 0x2c2   : > { %2098 = vst [vmem:[%s4748_s23 + $0x88] sm:$0xff] %v2090_v3 }
 0x2c3   : > { %v2361_v10 = vmax.f32 %v2341_v6, 0.0  ;;  %v2362_v11 = vmax.f32 %v2355_v7, 0.0 }
 0x2c5   : > { %2369 = vst [vmem:[%s4748_s23 + $0x50] sm:$0xff] %v2361_v10  ;;  %v2312_v12 = vpop.f32.mrf.mxu2  ;;  %v2326_v13 = vpop.f32.mrf.mxu3 }
 0x2c6   : > { %2371 = vst.msk [vmem:[%s4748_s23 + $0x58] sm:$0xff] %vm2370_vm4, %v2362_v11  ;;  %v2313_v14 = vadd.f32 %v2312_v12, %v2135_v8  ;;  %v2327_v15 = vadd.f32 %v2326_v13, %v2136_v9 }
 0x2c8   : > { %v2359_v16 = vmax.f32 %v2313_v14, 0.0  ;;  %v2360_v17 = vmax.f32 %v2327_v15, 0.0  ;;  %v2342_v45 = vpop.f32.mrf.mxu0  ;;  %v2356_v18 = vpop.f32.mrf.mxu1 }
 0x2c9   : > { %v2343_v19 = vadd.f32 %v2342_v45, %v2137_v0  ;;  %v2357_v20 = vadd.f32 %v2356_v18, %v2138_v1 }
 0x2ca   : > { %2367 = vst [vmem:[%s4748_s23 + $0x40] sm:$0xff] %v2359_v16 }
 0x2cb   : > { %2368 = vst [vmem:[%s4748_s23 + $0x48] sm:$0xff] %v2360_v17  ;;  %v2365_v21 = vmax.f32 %v2343_v19, 0.0  ;;  %v2366_v22 = vmax.f32 %v2357_v20, 0.0 }
 0x2cd   : > { %2374 = vst [vmem:[%s4748_s23 + $0xb0] sm:$0xff] %v2365_v21  ;;  %v2314_v23 = vpop.f32.mrf.mxu2  ;;  %v2328_v24 = vpop.f32.mrf.mxu3 }
 0x2ce   : > { %2375 = vst.msk [vmem:[%s4748_s23 + $0xb8] sm:$0xff] %vm2370_vm4, %v2366_v22  ;;  %v2315_v25 = vadd.f32 %v2314_v23, %v2135_v8  ;;  %v2329_v26 = vadd.f32 %v2328_v24, %v2136_v9 }
 0x2d0   : > { %v2363_v27 = vmax.f32 %v2315_v25, 0.0  ;;  %v2364_v28 = vmax.f32 %v2329_v26, 0.0 }
 0x2d2   : > { %2372 = vst [vmem:[%s4748_s23 + $0xa0] sm:$0xff] %v2363_v27 }
 0x2d3   : > { %2373 = vst [vmem:[%s4748_s23 + $0xa8] sm:$0xff] %v2364_v28 }
 0x2d4   : > { %3641 = shalt.err (!%p3638_p3)
}
 0x2d5   : > { %s3679_s29 = smov 1536   ;;  %s3680_s23 = smov 96  }
 0x2d6   : > { %3569 = dma.vmem_to_hbm [thread:$0]  (%p3769_p5), %s2391_s13, 3072, %s2393_s28, %s2377_s14, %s3679_s29, %s3679_s29, %s3680_s23  }
 0x2d7 PF: > { %p3575_p4 = scmp.ge.s32.totalorder %s3676_s12, 2  ;;  %s2407_s26 = sand.u32 1, %s3664_s30  }
 0x2d8   : > { %s2408_s17 = scalar_lea.sflag [#allocation4], %s2407_s26 }
 0x2d9   : > { %p3572_p7 = pnand %p3575_p4, %p3773_p6 }
 0x2db   : > { %p3573_p8 = pneg %p3572_p7 }
 0x2dd   : > { %3659 = dma.done.wait (%p3573_p8), %s2408_s17, 3072  }
 0x2de   : > { %3661 = vsyncadd (%p3573_p8), %s2408_s17, 4294964224  ;;  %p19_p9 = scmp.ge.s32.totalorder %s3756_s15, 4   ;;  %s4830_s30 = smov %s3668_s10 }
 0x2df   : > { %s4831_s10 = smov %s3672_s11  ;;  %s4832_s11 = smov %s3767_s18 }
 0x2e0   : > { %s4833_s12 = smov %s3756_s15  ;;  %21 = sbr.rel (!%p19_p9) target bundleno = 3 (0x3), region = 91 }
 0x2e5   :  { %2414 = vsyncpa [#allocation4], 1 }
 0x2e6   :  { %2416 = vsyncpa [#allocation4 + $0x1], 1 }

</bundles_post_ra>
